<compile_context>
chip_gen: v5e
topology: v5e:2x2
jax: 0.10.0
libtpu: 0.0.40
codegen_flags: <defaults>
</compile_context>

<pallas_src>
import functools

import jax
import jax.numpy as jnp
from jax.experimental import pallas as pl
from jax.experimental.pallas import tpu as pltpu

PADDING_ID = -100
NUM_STATS = 7          # [gathered prob, entropy, top-5 probs]
_NEG_BIG = -3.0e38     # finite "-inf" (avoids 0 * -inf = NaN in e * shifted)
_CV_MAX = 8192         # max vocab-chunk lanes (f32 working set ~1 MiB / 32 rows)
_K_PAD = 128           # MXU contraction dim for the 7 -> E projection


def _round_up(x, m):
    return (x + m - 1) // m * m


def _insert_top5(regs, x):
    """One step of the per-lane sorted-insertion network.

    regs: list of 5 [rows,128] f32 arrays, sorted descending per lane.
    x:    [rows,128] new candidates.  9 VPU ops per element.
    """
    out = []
    carry = x
    for j in range(5):
        out.append(jnp.maximum(regs[j], carry))
        if j < 4:
            carry = jnp.minimum(regs[j], carry)
    return out


def _full_dec_kernel(logits_ref, g_ref, w_ref, b_ref, emb_ref,
                     m_s, se_s, ses_s, top5_s):
    """Grid = (row_tiles, vocab_chunks); vocab chunk is the innermost axis."""
    k = pl.program_id(1)
    k_last = pl.num_programs(1) - 1
    ts, cv = logits_ref.shape
    n_slices = cv // 128

    # ---- per-row-tile init of the online-softmax / top-5 carries ----
    @pl.when(k == 0)
    def _init():
        m_s[...] = jnp.full_like(m_s, _NEG_BIG)
        se_s[...] = jnp.zeros_like(se_s)
        ses_s[...] = jnp.zeros_like(ses_s)
        top5_s[...] = jnp.full_like(top5_s, _NEG_BIG)

    chunk = logits_ref[...].astype(jnp.float32)                 # [ts, cv]

    # ---- Phase A: per-lane running top-5 over 128-lane slices ----
    regs = [top5_s[j] for j in range(5)]
    for s in range(n_slices):
        regs = _insert_top5(regs, chunk[:, s * 128:(s + 1) * 128])
    for j in range(5):
        top5_s[j] = regs[j]

    # ---- Phase B: online softmax statistics (single exp pass) ----
    # regs[0] is the per-lane running max over ALL chunks seen so far,
    # so its cross-lane max is the running global max (>= previous m).
    m_old = m_s[...]                                            # [ts, 1]
    m_new = jnp.max(regs[0], axis=-1, keepdims=True)            # [ts, 1]
    alpha = jnp.exp(m_old - m_new)                              # [ts, 1]

    shifted = chunk - m_new                                     # [ts, cv]
    e = jnp.exp(shifted)                                        # [ts, cv]

    se_old = se_s[...]
    ses_old = ses_s[...]
    se_new = alpha * se_old + jnp.sum(e, axis=-1, keepdims=True)
    ses_new = (alpha * (ses_old + (m_old - m_new) * se_old)
               + jnp.sum(e * shifted, axis=-1, keepdims=True))

    m_s[...] = m_new
    se_s[...] = se_new
    ses_s[...] = ses_new

    # ---- finalize: extract statistics and run the Linear(7, E) on the MXU ----
    @pl.when(k == k_last)
    def _finalize():
        inv = 1.0 / se_new                                      # exact (tol 1e-4)
        lse = jnp.log(se_new)
        entropy = lse - ses_new * inv                           # [ts, 1]
        gathered = jnp.exp(g_ref[...] - m_new) * inv            # [ts, 1]

        # Global top-5 values from the small [ts, 640] candidate slab.
        cand = jnp.concatenate(regs, axis=-1)                   # [ts, 640]
        ncand = cand.shape[-1]
        iota = jax.lax.broadcasted_iota(jnp.int32, cand.shape, 1)
        work = cand
        tops = []
        for r in range(5):
            mx = jnp.max(work, axis=-1, keepdims=True)
            tops.append(mx)
            if r < 4:                                           # first-occurrence mask
                arg = jnp.min(jnp.where(work == mx, iota, ncand),
                              axis=-1, keepdims=True)
                work = jnp.where(iota == arg, _NEG_BIG, work)
        top_p = [jnp.exp(t - m_new) * inv for t in tops]        # 5 x [ts, 1]

        # Scatter the 7 feature columns into a lane-dense [ts, 128] tile and
        # contract on the MXU with the zero-padded [128, E_pad] weight.
        lane = jax.lax.broadcasted_iota(jnp.int32, (ts, _K_PAD), 1)
        feats = jnp.zeros((ts, _K_PAD), jnp.float32)
        for j, col in enumerate([gathered, entropy] + top_p):
            feats = jnp.where(lane == j, col, feats)
        emb = jnp.dot(feats, w_ref[...],
                      preferred_element_type=jnp.float32) + b_ref[...]
        emb_ref[...] = emb.astype(emb_ref.dtype)


@functools.partial(jax.jit, static_argnames=("tile_rows", "vocab_chunk"))
def full_dec_embedding_pallas(logits, labels, w, b,
                              tile_rows=None, vocab_chunk=None):
    """Compute (embedding, attention_mask_decoder) from nmt logits + labels.

    logits: [B, S, V] float32/bfloat16 (kept in its upstream dtype for the DMA)
    labels: [B, S]    int32 (with -100 as padding id)
    w:      [E, 7]    Linear weight (PyTorch layout)
    b:      [E]       Linear bias
    returns embedding [B, S, E] float32, mask [B, S] int32
    """
    batch, seq, vocab = logits.shape
    emb_size = w.shape[0]
    n = batch * seq

    # Row tile: 32 keeps the 5 per-lane top registers in vregs (no spills).
    ts = tile_rows if tile_rows is not None else 32
    ts = min(_round_up(ts, 8), _round_up(n, 8))
    n_pad = _round_up(n, ts)

    # Vocab chunking: bound the live VMEM working set independent of V.
    v128 = _round_up(vocab, 128)
    cv_cap = vocab_chunk if vocab_chunk is not None else _CV_MAX
    n_chunks = max(1, -(-v128 // cv_cap))
    cv = _round_up(-(-v128 // n_chunks), 128)
    v_pad = cv * n_chunks

    e_pad = _round_up(emb_size, 128)                 # lane-dense output

    logits2 = logits.reshape(n, vocab)
    labels2 = labels.reshape(n).astype(jnp.int32)

    # Label-logit gather done in the wrapper (O(N) work, removes 3 full-width
    # VPU passes and the labels DMA stream from the kernel).
    ids = jnp.where(labels2 == PADDING_ID, 0, labels2)[:, None]
    g = jnp.take_along_axis(logits2, ids, axis=-1).astype(jnp.float32)   # [n,1]

    if v_pad != vocab or n_pad != n:
        logits2 = jnp.pad(logits2, ((0, n_pad - n), (0, v_pad - vocab)),
                          constant_values=_NEG_BIG)
    if n_pad != n:
        g = jnp.pad(g, ((0, n_pad - n), (0, 0)), constant_values=_NEG_BIG)

    # Linear params: transposed to [7, E], zero-padded to [128, E_pad] for MXU.
    w_pad = jnp.zeros((_K_PAD, e_pad), jnp.float32)
    w_pad = w_pad.at[:NUM_STATS, :emb_size].set(w.T.astype(jnp.float32))
    b2 = jnp.zeros((1, e_pad), jnp.float32)
    b2 = b2.at[:, :emb_size].set(b.astype(jnp.float32))

    grid = (n_pad // ts, n_chunks)

    # Honest VMEM accounting: double-buffered blocks + in-body f32 temporaries
    # (chunk cast, e, products ~ 4x) + scratch, with slack.
    itemsize = logits.dtype.itemsize
    need = (2 * ts * cv * itemsize            # logits double buffer
            + 4 * ts * cv * 4                 # live f32 temporaries in the body
            + 2 * ts * 128 * 4                # gathered-logit block (lane padded)
            + 2 * ts * e_pad * 4              # output double buffer
            + 2 * (_K_PAD + 8) * e_pad * 4    # weight + bias blocks
            + 8 * ts * 128 * 4                # scratch: 5 top regs + 3 stats
            + (2 << 20))                      # slack
    vmem_limit = int(min(max(2 * need, 24 << 20), 48 << 20))

    emb_flat = pl.pallas_call(
        _full_dec_kernel,
        out_shape=jax.ShapeDtypeStruct((n_pad, e_pad), jnp.float32),
        grid=grid,
        in_specs=[
            pl.BlockSpec((ts, cv), lambda i, k: (i, k)),
            pl.BlockSpec((ts, 1), lambda i, k: (i, 0)),
            pl.BlockSpec((_K_PAD, e_pad), lambda i, k: (0, 0)),
            pl.BlockSpec((1, e_pad), lambda i, k: (0, 0)),
        ],
        out_specs=pl.BlockSpec((ts, e_pad), lambda i, k: (i, 0)),
        scratch_shapes=[
            pltpu.VMEM((ts, 1), jnp.float32),      # running max m
            pltpu.VMEM((ts, 1), jnp.float32),      # running sum(e)
            pltpu.VMEM((ts, 1), jnp.float32),      # running sum(e*(x-m))
            pltpu.VMEM((5, ts, 128), jnp.float32),  # per-lane top-5 registers
        ],
        compiler_params=pltpu.CompilerParams(
            dimension_semantics=("parallel", "arbitrary"),
            vmem_limit_bytes=vmem_limit,
        ),
    )(logits2, g, w_pad, b2)

    embedding = emb_flat[:n, :emb_size].reshape(batch, seq, emb_size)
    # Mask is trivially cheap; keep it out of the kernel.
    mask = (labels != PADDING_ID).astype(jnp.int32)
    return embedding, mask


def full_dec_embedding_forward(nmt_logits, decoder_hidden_states, labels, w, b):
    """Mirrors FullDecEmbedding.forward: returns (decoder_hidden_states, embedding, mask)."""
    # TODO(synk): the external nmt_model forward (full HuggingFace seq2seq) is
    # not reproduced; its logits / decoder_hidden_states are inputs here.
    embedding, mask = full_dec_embedding_pallas(nmt_logits, labels, w, b)
    return decoder_hidden_states, embedding, mask


# ---------------------------- reference (plain JAX) ----------------------------
def _reference(logits, labels, w, b):
    ids = jnp.where(labels == PADDING_ID, 0, labels)[..., None]
    log_p = jax.nn.log_softmax(logits.astype(jnp.float32), axis=-1)
    p = jnp.exp(log_p)
    entropy = -jnp.sum(log_p * p, axis=-1, keepdims=True)
    probs = jnp.take_along_axis(p, ids, axis=-1)
    top5, _ = jax.lax.top_k(p, 5)
    stats = jnp.concatenate([probs, entropy, top5], axis=-1)          # [B,S,7]
    emb = stats @ w.T + b
    mask = (labels != PADDING_ID).astype(jnp.int32)
    return emb, mask


if __name__ == "__main__":
    key = jax.random.PRNGKey(0)
    k1, k2, k3, k4, k5 = jax.random.split(key, 5)

    B, S, V, E, H = 2, 8, 256, 32, 32

    # Simulated nmt_model outputs.
    logits = jax.random.normal(k1, (B, S, V), dtype=jnp.float32)
    decoder_hidden_states = tuple(
        jax.random.normal(jax.random.fold_in(k2, i), (B, S, H), dtype=jnp.float32)
        for i in range(2)
    )
    labels = jax.random.randint(k3, (B, S), 0, V, dtype=jnp.int32)
    labels = labels.at[:, -2:].set(PADDING_ID)  # some padded positions

    # Deterministic Linear(7, E) parameters.
    w = (jax.random.normal(k4, (E, NUM_STATS), dtype=jnp.float32)
         / jnp.sqrt(jnp.float32(NUM_STATS)))
    bias = jax.random.normal(k5, (E,), dtype=jnp.float32) * 0.01

    hidden, emb, mask = full_dec_embedding_forward(
        logits, decoder_hidden_states, labels, w, bias)
    jax.block_until_ready((emb, mask))

    emb_ref, mask_ref = _reference(logits, labels, w, bias)

    assert emb.shape == (B, S, E) and mask.shape == (B, S)
    assert jnp.allclose(emb, emb_ref, atol=1e-4, rtol=1e-4), "embedding mismatch"
    assert jnp.array_equal(mask, mask_ref), "mask mismatch"
    assert len(hidden) == len(decoder_hidden_states)

    print("KERNEL_OK")
</pallas_src>

<mosaic_0001>
module attributes {stable_mosaic.version = 11 : i64} {
  func.func @_full_dec_kernel(%arg0: i32, %arg1: i32, %arg2: memref<16x256xf32, #tpu.memory_space<vmem>>, %arg3: memref<16x1xf32, #tpu.memory_space<vmem>>, %arg4: memref<128x128xf32, #tpu.memory_space<vmem>>, %arg5: memref<1x128xf32, #tpu.memory_space<vmem>>, %arg6: memref<16x128xf32, #tpu.memory_space<vmem>>, %arg7: memref<16x1xf32, #tpu.memory_space<vmem>>, %arg8: memref<16x1xf32, #tpu.memory_space<vmem>>, %arg9: memref<16x1xf32, #tpu.memory_space<vmem>>, %arg10: memref<5x16x128xf32, #tpu.memory_space<vmem>>) attributes {dimension_semantics = [#tpu.dimension_semantics<parallel>, #tpu.dimension_semantics<arbitrary>], iteration_bounds = array<i64: 1, 1>, scalar_prefetch = 0 : i64, scratch_operands = 4 : i64, tpu.core_type = #tpu.core_type<tc>, window_params = [{transform_indices = @transform_0, window_bounds = array<i64: 16, 256>}, {transform_indices = @transform_1, window_bounds = array<i64: 16, 1>}, {pipeline_mode = #tpu.pipeline_mode<synchronous>, transform_indices = @transform_2, window_bounds = array<i64: 128, 128>}, {pipeline_mode = #tpu.pipeline_mode<synchronous>, transform_indices = @transform_3, window_bounds = array<i64: 1, 128>}, {transform_indices = @transform_4, window_bounds = array<i64: 16, 128>}]} {
    %c0_i32 = arith.constant 0 : i32
    %0 = arith.cmpi eq, %arg1, %c0_i32 : i32
    %1 = arith.extui %0 : i1 to i32
    %c0_i32_0 = arith.constant 0 : i32
    %2 = arith.cmpi ne, %1, %c0_i32_0 : i32
    scf.if %2 {
      %cst_44 = arith.constant -3.000000e+38 : f32
      %77 = vector.broadcast %cst_44 : f32 to vector<16x1xf32>
      %c0_45 = arith.constant 0 : index
      %c0_46 = arith.constant 0 : index
      %78 = vector.load %arg7[%c0_45, %c0_46] : memref<16x1xf32, #tpu.memory_space<vmem>>, vector<16x1xf32>
      tpu.vector_store %arg7[%c0_45, %c0_46], %77 {strides = array<i32>} : memref<16x1xf32, #tpu.memory_space<vmem>>, vector<16x1xf32>,
      %cst_47 = arith.constant 0.000000e+00 : f32
      %79 = vector.broadcast %cst_47 : f32 to vector<16x1xf32>
      %c0_48 = arith.constant 0 : index
      %c0_49 = arith.constant 0 : index
      %80 = vector.load %arg8[%c0_48, %c0_49] : memref<16x1xf32, #tpu.memory_space<vmem>>, vector<16x1xf32>
      tpu.vector_store %arg8[%c0_48, %c0_49], %79 {strides = array<i32>} : memref<16x1xf32, #tpu.memory_space<vmem>>, vector<16x1xf32>,
      %cst_50 = arith.constant 0.000000e+00 : f32
      %81 = vector.broadcast %cst_50 : f32 to vector<16x1xf32>
      %c0_51 = arith.constant 0 : index
      %c0_52 = arith.constant 0 : index
      %82 = vector.load %arg9[%c0_51, %c0_52] : memref<16x1xf32, #tpu.memory_space<vmem>>, vector<16x1xf32>
      tpu.vector_store %arg9[%c0_51, %c0_52], %81 {strides = array<i32>} : memref<16x1xf32, #tpu.memory_space<vmem>>, vector<16x1xf32>,
      %cst_53 = arith.constant -3.000000e+38 : f32
      %83 = vector.broadcast %cst_53 : f32 to vector<5x16x128xf32>
      %c0_54 = arith.constant 0 : index
      %c0_55 = arith.constant 0 : index
      %c0_56 = arith.constant 0 : index
      %84 = vector.load %arg10[%c0_54, %c0_55, %c0_56] : memref<5x16x128xf32, #tpu.memory_space<vmem>>, vector<5x16x128xf32>
      tpu.vector_store %arg10[%c0_54, %c0_55, %c0_56], %83 {strides = array<i32>} : memref<5x16x128xf32, #tpu.memory_space<vmem>>, vector<5x16x128xf32>,
    } else {
    }
    %c0 = arith.constant 0 : index
    %c0_1 = arith.constant 0 : index
    %3 = vector.load %arg2[%c0, %c0_1] : memref<16x256xf32, #tpu.memory_space<vmem>>, vector<16x256xf32>
    %c0_2 = arith.constant 0 : index
    %c0_3 = arith.constant 0 : index
    %c0_4 = arith.constant 0 : index
    %4 = vector.load %arg10[%c0_2, %c0_3, %c0_4] : memref<5x16x128xf32, #tpu.memory_space<vmem>>, vector<1x16x128xf32>
    %5 = vector.shape_cast %4 : vector<1x16x128xf32> to vector<16x128xf32>
    %c1 = arith.constant 1 : index
    %c0_5 = arith.constant 0 : index
    %c0_6 = arith.constant 0 : index
    %6 = vector.load %arg10[%c1, %c0_5, %c0_6] : memref<5x16x128xf32, #tpu.memory_space<vmem>>, vector<1x16x128xf32>
    %7 = vector.shape_cast %6 : vector<1x16x128xf32> to vector<16x128xf32>
    %c2 = arith.constant 2 : index
    %c0_7 = arith.constant 0 : index
    %c0_8 = arith.constant 0 : index
    %8 = vector.load %arg10[%c2, %c0_7, %c0_8] : memref<5x16x128xf32, #tpu.memory_space<vmem>>, vector<1x16x128xf32>
    %9 = vector.shape_cast %8 : vector<1x16x128xf32> to vector<16x128xf32>
    %c3 = arith.constant 3 : index
    %c0_9 = arith.constant 0 : index
    %c0_10 = arith.constant 0 : index
    %10 = vector.load %arg10[%c3, %c0_9, %c0_10] : memref<5x16x128xf32, #tpu.memory_space<vmem>>, vector<1x16x128xf32>
    %11 = vector.shape_cast %10 : vector<1x16x128xf32> to vector<16x128xf32>
    %c4 = arith.constant 4 : index
    %c0_11 = arith.constant 0 : index
    %c0_12 = arith.constant 0 : index
    %12 = vector.load %arg10[%c4, %c0_11, %c0_12] : memref<5x16x128xf32, #tpu.memory_space<vmem>>, vector<1x16x128xf32>
    %13 = vector.shape_cast %12 : vector<1x16x128xf32> to vector<16x128xf32>
    %14 = vector.extract_strided_slice %3 {offsets = [0, 0], sizes = [16, 128], strides = [1, 1]} : vector<16x256xf32> to vector<16x128xf32>
    %15 = arith.maximumf %5, %14 : vector<16x128xf32>
    %16 = arith.minimumf %5, %14 : vector<16x128xf32>
    %17 = arith.maximumf %7, %16 : vector<16x128xf32>
    %18 = arith.minimumf %7, %16 : vector<16x128xf32>
    %19 = arith.maximumf %9, %18 : vector<16x128xf32>
    %20 = arith.minimumf %9, %18 : vector<16x128xf32>
    %21 = arith.maximumf %11, %20 : vector<16x128xf32>
    %22 = arith.minimumf %11, %20 : vector<16x128xf32>
    %23 = arith.maximumf %13, %22 : vector<16x128xf32>
    %24 = vector.extract_strided_slice %3 {offsets = [0, 128], sizes = [16, 128], strides = [1, 1]} : vector<16x256xf32> to vector<16x128xf32>
    %25 = arith.maximumf %15, %24 : vector<16x128xf32>
    %26 = arith.minimumf %15, %24 : vector<16x128xf32>
    %27 = arith.maximumf %17, %26 : vector<16x128xf32>
    %28 = arith.minimumf %17, %26 : vector<16x128xf32>
    %29 = arith.maximumf %19, %28 : vector<16x128xf32>
    %30 = arith.minimumf %19, %28 : vector<16x128xf32>
    %31 = arith.maximumf %21, %30 : vector<16x128xf32>
    %32 = arith.minimumf %21, %30 : vector<16x128xf32>
    %33 = arith.maximumf %23, %32 : vector<16x128xf32>
    %c0_13 = arith.constant 0 : index
    %c0_14 = arith.constant 0 : index
    %c0_15 = arith.constant 0 : index
    %34 = vector.load %arg10[%c0_13, %c0_14, %c0_15] : memref<5x16x128xf32, #tpu.memory_space<vmem>>, vector<1x16x128xf32>
    %35 = vector.shape_cast %34 : vector<1x16x128xf32> to vector<16x128xf32>
    %36 = vector.shape_cast %25 : vector<16x128xf32> to vector<1x16x128xf32>
    tpu.vector_store %arg10[%c0_13, %c0_14, %c0_15], %36 {strides = array<i32>} : memref<5x16x128xf32, #tpu.memory_space<vmem>>, vector<1x16x128xf32>,
    %c1_16 = arith.constant 1 : index
    %c0_17 = arith.constant 0 : index
    %c0_18 = arith.constant 0 : index
    %37 = vector.load %arg10[%c1_16, %c0_17, %c0_18] : memref<5x16x128xf32, #tpu.memory_space<vmem>>, vector<1x16x128xf32>
    %38 = vector.shape_cast %37 : vector<1x16x128xf32> to vector<16x128xf32>
    %39 = vector.shape_cast %27 : vector<16x128xf32> to vector<1x16x128xf32>
    tpu.vector_store %arg10[%c1_16, %c0_17, %c0_18], %39 {strides = array<i32>} : memref<5x16x128xf32, #tpu.memory_space<vmem>>, vector<1x16x128xf32>,
    %c2_19 = arith.constant 2 : index
    %c0_20 = arith.constant 0 : index
    %c0_21 = arith.constant 0 : index
    %40 = vector.load %arg10[%c2_19, %c0_20, %c0_21] : memref<5x16x128xf32, #tpu.memory_space<vmem>>, vector<1x16x128xf32>
    %41 = vector.shape_cast %40 : vector<1x16x128xf32> to vector<16x128xf32>
    %42 = vector.shape_cast %29 : vector<16x128xf32> to vector<1x16x128xf32>
    tpu.vector_store %arg10[%c2_19, %c0_20, %c0_21], %42 {strides = array<i32>} : memref<5x16x128xf32, #tpu.memory_space<vmem>>, vector<1x16x128xf32>,
    %c3_22 = arith.constant 3 : index
    %c0_23 = arith.constant 0 : index
    %c0_24 = arith.constant 0 : index
    %43 = vector.load %arg10[%c3_22, %c0_23, %c0_24] : memref<5x16x128xf32, #tpu.memory_space<vmem>>, vector<1x16x128xf32>
    %44 = vector.shape_cast %43 : vector<1x16x128xf32> to vector<16x128xf32>
    %45 = vector.shape_cast %31 : vector<16x128xf32> to vector<1x16x128xf32>
    tpu.vector_store %arg10[%c3_22, %c0_23, %c0_24], %45 {strides = array<i32>} : memref<5x16x128xf32, #tpu.memory_space<vmem>>, vector<1x16x128xf32>,
    %c4_25 = arith.constant 4 : index
    %c0_26 = arith.constant 0 : index
    %c0_27 = arith.constant 0 : index
    %46 = vector.load %arg10[%c4_25, %c0_26, %c0_27] : memref<5x16x128xf32, #tpu.memory_space<vmem>>, vector<1x16x128xf32>
    %47 = vector.shape_cast %46 : vector<1x16x128xf32> to vector<16x128xf32>
    %48 = vector.shape_cast %33 : vector<16x128xf32> to vector<1x16x128xf32>
    tpu.vector_store %arg10[%c4_25, %c0_26, %c0_27], %48 {strides = array<i32>} : memref<5x16x128xf32, #tpu.memory_space<vmem>>, vector<1x16x128xf32>,
    %c0_28 = arith.constant 0 : index
    %c0_29 = arith.constant 0 : index
    %49 = vector.load %arg7[%c0_28, %c0_29] : memref<16x1xf32, #tpu.memory_space<vmem>>, vector<16x1xf32>
    %cst = arith.constant dense<0xFF800000> : vector<16xf32>
    %50 = vector.multi_reduction <maximumf>, %25, %cst [1] : vector<16x128xf32> to vector<16xf32>
    %51 = vector.shape_cast %50 : vector<16xf32> to vector<16x1xf32>
    %52 = arith.subf %49, %51 : vector<16x1xf32>
    %53 = math.exp %52 : vector<16x1xf32>
    %54 = vector.broadcast %51 : vector<16x1xf32> to vector<16x256xf32>
    %55 = arith.subf %3, %54 : vector<16x256xf32>
    %56 = math.exp %55 : vector<16x256xf32>
    %c0_30 = arith.constant 0 : index
    %c0_31 = arith.constant 0 : index
    %57 = vector.load %arg8[%c0_30, %c0_31] : memref<16x1xf32, #tpu.memory_space<vmem>>, vector<16x1xf32>
    %c0_32 = arith.constant 0 : index
    %c0_33 = arith.constant 0 : index
    %58 = vector.load %arg9[%c0_32, %c0_33] : memref<16x1xf32, #tpu.memory_space<vmem>>, vector<16x1xf32>
    %59 = arith.mulf %53, %57 : vector<16x1xf32>
    %cst_34 = arith.constant dense<0.000000e+00> : vector<16xf32>
    %60 = vector.multi_reduction <add>, %56, %cst_34 [1] : vector<16x256xf32> to vector<16xf32>
    %61 = vector.shape_cast %60 : vector<16xf32> to vector<16x1xf32>
    %62 = arith.addf %59, %61 : vector<16x1xf32>
    %63 = arith.subf %49, %51 : vector<16x1xf32>
    %64 = arith.mulf %63, %57 : vector<16x1xf32>
    %65 = arith.addf %58, %64 : vector<16x1xf32>
    %66 = arith.mulf %53, %65 : vector<16x1xf32>
    %67 = arith.mulf %56, %55 : vector<16x256xf32>
    %cst_35 = arith.constant dense<0.000000e+00> : vector<16xf32>
    %68 = vector.multi_reduction <add>, %67, %cst_35 [1] : vector<16x256xf32> to vector<16xf32>
    %69 = vector.shape_cast %68 : vector<16xf32> to vector<16x1xf32>
    %70 = arith.addf %66, %69 : vector<16x1xf32>
    %c0_36 = arith.constant 0 : index
    %c0_37 = arith.constant 0 : index
    %71 = vector.load %arg7[%c0_36, %c0_37] : memref<16x1xf32, #tpu.memory_space<vmem>>, vector<16x1xf32>
    tpu.vector_store %arg7[%c0_36, %c0_37], %51 {strides = array<i32>} : memref<16x1xf32, #tpu.memory_space<vmem>>, vector<16x1xf32>,
    %c0_38 = arith.constant 0 : index
    %c0_39 = arith.constant 0 : index
    %72 = vector.load %arg8[%c0_38, %c0_39] : memref<16x1xf32, #tpu.memory_space<vmem>>, vector<16x1xf32>
    tpu.vector_store %arg8[%c0_38, %c0_39], %62 {strides = array<i32>} : memref<16x1xf32, #tpu.memory_space<vmem>>, vector<16x1xf32>,
    %c0_40 = arith.constant 0 : index
    %c0_41 = arith.constant 0 : index
    %73 = vector.load %arg9[%c0_40, %c0_41] : memref<16x1xf32, #tpu.memory_space<vmem>>, vector<16x1xf32>
    tpu.vector_store %arg9[%c0_40, %c0_41], %70 {strides = array<i32>} : memref<16x1xf32, #tpu.memory_space<vmem>>, vector<16x1xf32>,
    %c0_i32_42 = arith.constant 0 : i32
    %74 = arith.cmpi eq, %arg1, %c0_i32_42 : i32
    %75 = arith.extui %74 : i1 to i32
    %c0_i32_43 = arith.constant 0 : i32
    %76 = arith.cmpi ne, %75, %c0_i32_43 : i32
    scf.if %76 {
      %cst_44 = arith.constant 1.000000e+00 : f32
      %77 = vector.broadcast %cst_44 : f32 to vector<16x1xf32>
      %78 = arith.divf %77, %62 : vector<16x1xf32>
      %79 = math.log %62 : vector<16x1xf32>
      %80 = arith.mulf %70, %78 : vector<16x1xf32>
      %81 = arith.subf %79, %80 : vector<16x1xf32>
      %c0_45 = arith.constant 0 : index
      %c0_46 = arith.constant 0 : index
      %82 = vector.load %arg3[%c0_45, %c0_46] : memref<16x1xf32, #tpu.memory_space<vmem>>, vector<16x1xf32>
      %83 = arith.subf %82, %51 : vector<16x1xf32>
      %84 = math.exp %83 : vector<16x1xf32>
      %85 = arith.mulf %84, %78 : vector<16x1xf32>
      %86 = tpu.concatenate %25, %27, %29, %31, %33 in 1 : vector<16x128xf32>, vector<16x128xf32>, vector<16x128xf32>, vector<16x128xf32>, vector<16x128xf32> -> vector<16x640xf32>
      %87 = tpu.iota {dimensions = array<i32: 1>} : vector<16x640xi32>
      %cst_47 = arith.constant dense<0xFF800000> : vector<16xf32>
      %88 = vector.multi_reduction <maximumf>, %86, %cst_47 [1] : vector<16x640xf32> to vector<16xf32>
      %89 = vector.shape_cast %88 : vector<16xf32> to vector<16x1xf32>
      %90 = vector.broadcast %89 : vector<16x1xf32> to vector<16x640xf32>
      %91 = arith.cmpf oeq, %86, %90 : vector<16x640xf32>
      %c640_i32 = arith.constant 640 : i32
      %92 = vector.broadcast %c640_i32 : i32 to vector<16x640xi32>
      %93 = arith.select %91, %87, %92 : vector<16x640xi1>, vector<16x640xi32>
      %cst_48 = arith.constant dense<2147483647> : vector<16xi32>
      %94 = vector.multi_reduction <minsi>, %93, %cst_48 [1] : vector<16x640xi32> to vector<16xi32>
      %95 = vector.shape_cast %94 : vector<16xi32> to vector<16x1xi32>
      %96 = vector.broadcast %95 : vector<16x1xi32> to vector<16x640xi32>
      %97 = arith.cmpi eq, %87, %96 : vector<16x640xi32>
      %cst_49 = arith.constant -3.000000e+38 : f32
      %98 = vector.broadcast %cst_49 : f32 to vector<16x640xf32>
      %99 = arith.select %97, %98, %86 : vector<16x640xi1>, vector<16x640xf32>
      %cst_50 = arith.constant dense<0xFF800000> : vector<16xf32>
      %100 = vector.multi_reduction <maximumf>, %99, %cst_50 [1] : vector<16x640xf32> to vector<16xf32>
      %101 = vector.shape_cast %100 : vector<16xf32> to vector<16x1xf32>
      %102 = vector.broadcast %101 : vector<16x1xf32> to vector<16x640xf32>
      %103 = arith.cmpf oeq, %99, %102 : vector<16x640xf32>
      %c640_i32_51 = arith.constant 640 : i32
      %104 = vector.broadcast %c640_i32_51 : i32 to vector<16x640xi32>
      %105 = arith.select %103, %87, %104 : vector<16x640xi1>, vector<16x640xi32>
      %cst_52 = arith.constant dense<2147483647> : vector<16xi32>
      %106 = vector.multi_reduction <minsi>, %105, %cst_52 [1] : vector<16x640xi32> to vector<16xi32>
      %107 = vector.shape_cast %106 : vector<16xi32> to vector<16x1xi32>
      %108 = vector.broadcast %107 : vector<16x1xi32> to vector<16x640xi32>
      %109 = arith.cmpi eq, %87, %108 : vector<16x640xi32>
      %cst_53 = arith.constant -3.000000e+38 : f32
      %110 = vector.broadcast %cst_53 : f32 to vector<16x640xf32>
      %111 = arith.select %109, %110, %99 : vector<16x640xi1>, vector<16x640xf32>
      %cst_54 = arith.constant dense<0xFF800000> : vector<16xf32>
      %112 = vector.multi_reduction <maximumf>, %111, %cst_54 [1] : vector<16x640xf32> to vector<16xf32>
      %113 = vector.shape_cast %112 : vector<16xf32> to vector<16x1xf32>
      %114 = vector.broadcast %113 : vector<16x1xf32> to vector<16x640xf32>
      %115 = arith.cmpf oeq, %111, %114 : vector<16x640xf32>
      %c640_i32_55 = arith.constant 640 : i32
      %116 = vector.broadcast %c640_i32_55 : i32 to vector<16x640xi32>
      %117 = arith.select %115, %87, %116 : vector<16x640xi1>, vector<16x640xi32>
      %cst_56 = arith.constant dense<2147483647> : vector<16xi32>
      %118 = vector.multi_reduction <minsi>, %117, %cst_56 [1] : vector<16x640xi32> to vector<16xi32>
      %119 = vector.shape_cast %118 : vector<16xi32> to vector<16x1xi32>
      %120 = vector.broadcast %119 : vector<16x1xi32> to vector<16x640xi32>
      %121 = arith.cmpi eq, %87, %120 : vector<16x640xi32>
      %cst_57 = arith.constant -3.000000e+38 : f32
      %122 = vector.broadcast %cst_57 : f32 to vector<16x640xf32>
      %123 = arith.select %121, %122, %111 : vector<16x640xi1>, vector<16x640xf32>
      %cst_58 = arith.constant dense<0xFF800000> : vector<16xf32>
      %124 = vector.multi_reduction <maximumf>, %123, %cst_58 [1] : vector<16x640xf32> to vector<16xf32>
      %125 = vector.shape_cast %124 : vector<16xf32> to vector<16x1xf32>
      %126 = vector.broadcast %125 : vector<16x1xf32> to vector<16x640xf32>
      %127 = arith.cmpf oeq, %123, %126 : vector<16x640xf32>
      %c640_i32_59 = arith.constant 640 : i32
      %128 = vector.broadcast %c640_i32_59 : i32 to vector<16x640xi32>
      %129 = arith.select %127, %87, %128 : vector<16x640xi1>, vector<16x640xi32>
      %cst_60 = arith.constant dense<2147483647> : vector<16xi32>
      %130 = vector.multi_reduction <minsi>, %129, %cst_60 [1] : vector<16x640xi32> to vector<16xi32>
      %131 = vector.shape_cast %130 : vector<16xi32> to vector<16x1xi32>
      %132 = vector.broadcast %131 : vector<16x1xi32> to vector<16x640xi32>
      %133 = arith.cmpi eq, %87, %132 : vector<16x640xi32>
      %cst_61 = arith.constant -3.000000e+38 : f32
      %134 = vector.broadcast %cst_61 : f32 to vector<16x640xf32>
      %135 = arith.select %133, %134, %123 : vector<16x640xi1>, vector<16x640xf32>
      %cst_62 = arith.constant dense<0xFF800000> : vector<16xf32>
      %136 = vector.multi_reduction <maximumf>, %135, %cst_62 [1] : vector<16x640xf32> to vector<16xf32>
      %137 = vector.shape_cast %136 : vector<16xf32> to vector<16x1xf32>
      %138 = arith.subf %89, %51 : vector<16x1xf32>
      %139 = math.exp %138 : vector<16x1xf32>
      %140 = arith.mulf %139, %78 : vector<16x1xf32>
      %141 = arith.subf %101, %51 : vector<16x1xf32>
      %142 = math.exp %141 : vector<16x1xf32>
      %143 = arith.mulf %142, %78 : vector<16x1xf32>
      %144 = arith.subf %113, %51 : vector<16x1xf32>
      %145 = math.exp %144 : vector<16x1xf32>
      %146 = arith.mulf %145, %78 : vector<16x1xf32>
      %147 = arith.subf %125, %51 : vector<16x1xf32>
      %148 = math.exp %147 : vector<16x1xf32>
      %149 = arith.mulf %148, %78 : vector<16x1xf32>
      %150 = arith.subf %137, %51 : vector<16x1xf32>
      %151 = math.exp %150 : vector<16x1xf32>
      %152 = arith.mulf %151, %78 : vector<16x1xf32>
      %153 = tpu.iota {dimensions = array<i32: 1>} : vector<16x128xi32>
      %cst_63 = arith.constant 0.000000e+00 : f32
      %154 = vector.broadcast %cst_63 : f32 to vector<16x128xf32>
      %c0_i32_64 = arith.constant 0 : i32
      %155 = vector.broadcast %c0_i32_64 : i32 to vector<16x128xi32>
      %156 = arith.cmpi eq, %153, %155 : vector<16x128xi32>
      %157 = vector.shape_cast %85 : vector<16x1xf32> to vector<16x1xf32>
      %158 = vector.broadcast %157 : vector<16x1xf32> to vector<16x128xf32>
      %159 = arith.select %156, %158, %154 : vector<16x128xi1>, vector<16x128xf32>
      %c1_i32 = arith.constant 1 : i32
      %160 = vector.broadcast %c1_i32 : i32 to vector<16x128xi32>
      %161 = arith.cmpi eq, %153, %160 : vector<16x128xi32>
      %162 = vector.shape_cast %81 : vector<16x1xf32> to vector<16x1xf32>
      %163 = vector.broadcast %162 : vector<16x1xf32> to vector<16x128xf32>
      %164 = arith.select %161, %163, %159 : vector<16x128xi1>, vector<16x128xf32>
      %c2_i32 = arith.constant 2 : i32
      %165 = vector.broadcast %c2_i32 : i32 to vector<16x128xi32>
      %166 = arith.cmpi eq, %153, %165 : vector<16x128xi32>
      %167 = vector.shape_cast %140 : vector<16x1xf32> to vector<16x1xf32>
      %168 = vector.broadcast %167 : vector<16x1xf32> to vector<16x128xf32>
      %169 = arith.select %166, %168, %164 : vector<16x128xi1>, vector<16x128xf32>
      %c3_i32 = arith.constant 3 : i32
      %170 = vector.broadcast %c3_i32 : i32 to vector<16x128xi32>
      %171 = arith.cmpi eq, %153, %170 : vector<16x128xi32>
      %172 = vector.shape_cast %143 : vector<16x1xf32> to vector<16x1xf32>
      %173 = vector.broadcast %172 : vector<16x1xf32> to vector<16x128xf32>
      %174 = arith.select %171, %173, %169 : vector<16x128xi1>, vector<16x128xf32>
      %c4_i32 = arith.constant 4 : i32
      %175 = vector.broadcast %c4_i32 : i32 to vector<16x128xi32>
      %176 = arith.cmpi eq, %153, %175 : vector<16x128xi32>
      %177 = vector.shape_cast %146 : vector<16x1xf32> to vector<16x1xf32>
      %178 = vector.broadcast %177 : vector<16x1xf32> to vector<16x128xf32>
      %179 = arith.select %176, %178, %174 : vector<16x128xi1>, vector<16x128xf32>
      %c5_i32 = arith.constant 5 : i32
      %180 = vector.broadcast %c5_i32 : i32 to vector<16x128xi32>
      %181 = arith.cmpi eq, %153, %180 : vector<16x128xi32>
      %182 = vector.shape_cast %149 : vector<16x1xf32> to vector<16x1xf32>
      %183 = vector.broadcast %182 : vector<16x1xf32> to vector<16x128xf32>
      %184 = arith.select %181, %183, %179 : vector<16x128xi1>, vector<16x128xf32>
      %c6_i32 = arith.constant 6 : i32
      %185 = vector.broadcast %c6_i32 : i32 to vector<16x128xi32>
      %186 = arith.cmpi eq, %153, %185 : vector<16x128xi32>
      %187 = vector.shape_cast %152 : vector<16x1xf32> to vector<16x1xf32>
      %188 = vector.broadcast %187 : vector<16x1xf32> to vector<16x128xf32>
      %189 = arith.select %186, %188, %184 : vector<16x128xi1>, vector<16x128xf32>
      %c0_65 = arith.constant 0 : index
      %c0_66 = arith.constant 0 : index
      %190 = vector.load %arg4[%c0_65, %c0_66] : memref<128x128xf32, #tpu.memory_space<vmem>>, vector<128x128xf32>
      %cst_67 = arith.constant dense<0.000000e+00> : vector<16x128xf32>
      %191 = tpu.matmul %189, %190, %cst_67 {dimension_numbers = #tpu.dot_dimension_numbers<[1], [0], [0], [1], [0, 0, 1, 1], [], []>} : vector<16x128xf32>, vector<128x128xf32>, vector<16x128xf32> -> vector<16x128xf32>
      %c0_68 = arith.constant 0 : index
      %c0_69 = arith.constant 0 : index
      %192 = vector.load %arg5[%c0_68, %c0_69] : memref<1x128xf32, #tpu.memory_space<vmem>>, vector<1x128xf32>
      %193 = vector.broadcast %192 : vector<1x128xf32> to vector<16x128xf32>
      %194 = arith.addf %191, %193 : vector<16x128xf32>
      %c0_70 = arith.constant 0 : index
      %c0_71 = arith.constant 0 : index
      %195 = vector.load %arg6[%c0_70, %c0_71] : memref<16x128xf32, #tpu.memory_space<vmem>>, vector<16x128xf32>
      tpu.vector_store %arg6[%c0_70, %c0_71], %194 {strides = array<i32>} : memref<16x128xf32, #tpu.memory_space<vmem>>, vector<16x128xf32>,
    } else {
    }
    return
  }
  func.func @transform_0(%arg0: i32, %arg1: i32) -> (i32, i32) {
    %c0_i32 = arith.constant 0 : i32
    return %arg0, %arg1 : i32, i32
  }
  func.func @transform_1(%arg0: i32, %arg1: i32) -> (i32, i32) {
    %c0_i32 = arith.constant 0 : i32
    %c0_i32_0 = arith.constant 0 : i32
    return %arg0, %c0_i32 : i32, i32
  }
  func.func @transform_2(%arg0: i32, %arg1: i32) -> (i32, i32) {
    %c0_i32 = arith.constant 0 : i32
    %c0_i32_0 = arith.constant 0 : i32
    %c0_i32_1 = arith.constant 0 : i32
    return %c0_i32, %c0_i32_0 : i32, i32
  }
  func.func @transform_3(%arg0: i32, %arg1: i32) -> (i32, i32) {
    %c0_i32 = arith.constant 0 : i32
    %c0_i32_0 = arith.constant 0 : i32
    %c0_i32_1 = arith.constant 0 : i32
    return %c0_i32, %c0_i32_0 : i32, i32
  }
  func.func @transform_4(%arg0: i32, %arg1: i32) -> (i32, i32) {
    %c0_i32 = arith.constant 0 : i32
    %c0_i32_0 = arith.constant 0 : i32
    return %arg0, %c0_i32 : i32, i32
  }
}

</mosaic_0001>

<bundles_post_ra>
// kernel: full_dec_embedding_pallas.1
= control target key start
LH: loop header
LB: loop body
LE: loop exit
PB: predicated region body
PF: predicated region fallthrough
CT: control target
= control target key end

     0   :  { %v216_v48 = vlaneseq  ;;  %s1501_s0 = inlined_call_operand.vmem [shape: f32[16,256], index: 0, kind: input, shape index: {}]   ;;  %s1502_s1 = inlined_call_operand.vmem [shape: f32[16,1], index: 1, kind: input, shape index: {}]   ;;  %s1503_s3 = inlined_call_operand.vmem [shape: f32[1,128], index: 3, kind: input, shape index: {}]   ;;  %s1504_s2 = inlined_call_operand.vmem [shape: f32[128,128], index: 2, kind: input, shape index: {}]   ;;  %s1505_s4 = inlined_call_operand.vmem [shape: f32[16,128], index: 4, kind: output, shape index: {}]  }
   0x1   :  { %v931_v0 = vld [vmem:[%s1501_s0] sm:$0xff]  ;;  %v936_v1 = vld [vmem:[%s1501_s0 + $0x8] sm:$0xff]  ;;  %v941_v2 = vld [vmem:[%s1501_s0 + $0x10] sm:$0xff] }
   0x2   :  { %v56_v3 = vmax.f32 %v931_v0, -3e+38  ;;  %v58_v4 = vmin.f32 %v931_v0, -3e+38  ;;  %v948_v5 = vld [vmem:[%s1501_s0 + $0x18] sm:$0xff]  ;;  %v986_v49 = vand.u32 127, %v216_v48 }
   0x3   :  { %v57_v6 = vmax.f32 %v941_v2, -3e+38  ;;  %v59_v7 = vmin.f32 %v941_v2, -3e+38 }
   0x4   :  { %v60_v8 = vmax.f32 %v58_v4, -3e+38  ;;  %v62_v9 = vmin.f32 %v58_v4, -3e+38  ;;  %v76_v10 = vmin.f32 %v56_v3, %v936_v1  ;;  %v954_v11 = vmax.f32 %v56_v3, %v936_v1 }
   0x5   :  { %v61_v12 = vmax.f32 %v59_v7, -3e+38  ;;  %v63_v13 = vmin.f32 %v59_v7, -3e+38  ;;  %v77_v14 = vmin.f32 %v57_v6, %v948_v5  ;;  %v958_v18 = vmax.f32 %v57_v6, %v948_v5 }
   0x6   :  { %v64_v15 = vmax.f32 %v62_v9, -3e+38  ;;  %v66_v16 = vmin.f32 %v62_v9, -3e+38  ;;  %v80_v17 = vmin.f32 %v60_v8, %v76_v10  ;;  %v960_v19 = vmax.f32 %v60_v8, %v76_v10 }
   0x7   :  { %v65_v20 = vmax.f32 %v63_v13, -3e+38  ;;  %v67_v21 = vmin.f32 %v63_v13, -3e+38  ;;  %v81_v22 = vmin.f32 %v61_v12, %v77_v14  ;;  %v974_v39 = vmax.f32 %v61_v12, %v77_v14 }
   0x8   :  { %v68_v23 = vmax.f32 %v66_v16, -3e+38  ;;  %v70_v24 = vmin.f32 %v66_v16, -3e+38  ;;  %v962_v25 = vmax.f32 %v64_v15, %v80_v17  ;;  %v84_v26 = vmin.f32 %v64_v15, %v80_v17 }
   0x9   :  { %v69_v27 = vmax.f32 %v67_v21, -3e+38  ;;  %v71_v28 = vmin.f32 %v67_v21, -3e+38  ;;  %v964_v29 = vmax.f32 %v65_v20, %v81_v22  ;;  %v85_v30 = vmin.f32 %v65_v20, %v81_v22 }
   0xa   :  { %v72_v31 = vmax.f32 %v70_v24, -3e+38  ;;  %v966_v32 = vmax.f32 %v68_v23, %v84_v26  ;;  %v88_v33 = vmin.f32 %v68_v23, %v84_v26  ;;  %v222_v34 = vmax.f32 %v954_v11, %v962_v25 }
   0xb   :  { %v73_v35 = vmax.f32 %v71_v28, -3e+38  ;;  %v89_v36 = vmin.f32 %v69_v27, %v85_v30  ;;  %v977_v41 = vmax.f32 %v69_v27, %v85_v30  ;;  %v228_v43 = vmax.f32 %v958_v18, %v964_v29 }
   0xc   :  { %v970_v37 = vmax.f32 %v72_v31, %v88_v33  ;;  %v223_v38 = vmax.f32 %v960_v19, %v966_v32  ;;  %v989_v50 = vadd.s32 128, %v986_v49  ;;  %v992_v51 = vadd.s32 256, %v986_v49 }
   0xd   :  { %v979_v42 = vmax.f32 %v73_v35, %v89_v36  ;;  %v229_v45 = vmax.f32 %v974_v39, %v977_v41  ;;  %v995_v52 = vadd.s32 384, %v986_v49  ;;  %v1000_v54 = vadd.s32 512, %v986_v49 }
   0xe   :  { %v224_v40 = vmax.f32 %v222_v34, %v970_v37 }
   0xf   :  { %v230_v46 = vmax.f32 %v228_v43, %v979_v42 }
  0x10   :  { %v225_v44 = vmax.f32 %v224_v40, %v223_v38 }
  0x11   :  { %v231_v47 = vmax.f32 %v230_v46, %v229_v45 }
  0x12   :  { %226 = vmax.xlane.f32.xlu0 %v225_v44 }
  0x1a   :  { %232 = vmax.xlane.f32.xlu0 %v231_v47 }
  0x85   :  { %v997_v53 = vpop.xlane.xlu0 %226 }
  0x86   :  { %vm234_vm0 = vcmp.eq.f32.partialorder %v954_v11, %v997_v53  ;;  %vm235_vm1 = vcmp.eq.f32.partialorder %v960_v19, %v997_v53  ;;  %vm236_vm2 = vcmp.eq.f32.partialorder %v962_v25, %v997_v53  ;;  %vm237_vm3 = vcmp.eq.f32.partialorder %v966_v32, %v997_v53 }
  0x87   :  { %vm238_vm4 = vcmp.eq.f32.partialorder %v970_v37, %v997_v53  ;;  %v244_v55 = vsel %vm234_vm0, %v986_v49, 640  ;;  %v245_v56 = vsel %vm235_vm1, %v989_v50, 640  ;;  %v246_v57 = vsel %vm236_vm2, %v992_v51, 640 }
  0x88   :  { %v247_v58 = vsel %vm237_vm3, %v995_v52, 640  ;;  %vm254_vm5 = vcmp.lt.s32.totalorder %v244_v55, %v246_v57  ;;  %v248_v59 = vsel %vm238_vm4, %v1000_v54, 640 }
  0x89   :  { %v255_v60 = vsel %vm254_vm5, %v244_v55, %v246_v57  ;;  %vm256_vm6 = vcmp.lt.s32.totalorder %v245_v56, %v247_v58 }
  0x8a   :  { %vm258_vm7 = vcmp.lt.s32.totalorder %v255_v60, %v248_v59  ;;  %v257_v61 = vsel %vm256_vm6, %v245_v56, %v247_v58 }
  0x8b   :  { %v259_v62 = vsel %vm258_vm7, %v255_v60, %v248_v59 }
  0x8c   :  { %vm260_vm8 = vcmp.lt.s32.totalorder %v259_v62, %v257_v61 }
  0x8d   :  { %v1017_v63 = vpop.xlane.xlu0 %232  ;;  %v261_v3 = vsel %vm260_vm8, %v259_v62, %v257_v61 }
  0x8e   :  { %v263_v4 = vshra.s32 %v261_v3, 16  ;;  %vm239_vm9 = vcmp.eq.f32.partialorder %v958_v18, %v1017_v63  ;;  %vm240_vm10 = vcmp.eq.f32.partialorder %v974_v39, %v1017_v63  ;;  %vm241_vm11 = vcmp.eq.f32.partialorder %v964_v29, %v1017_v63 }
  0x8f   :  { %vm242_vm12 = vcmp.eq.f32.partialorder %v977_v41, %v1017_v63  ;;  %vm243_vm13 = vcmp.eq.f32.partialorder %v979_v42, %v1017_v63  ;;  %v249_v6 = vsel %vm239_vm9, %v986_v49, 640  ;;  %v250_v7 = vsel %vm240_vm10, %v989_v50, 640 }
  0x90   :  { %v265_v8 = vcvt.s32.f32 %v263_v4  ;;  %v251_v9 = vsel %vm241_vm11, %v992_v51, 640  ;;  %v252_v10 = vsel %vm242_vm12, %v995_v52, 640  ;;  %v253_v12 = vsel %vm243_vm13, %v1000_v54, 640 }
  0x91   :  { %vm276_vm14 = vcmp.lt.s32.totalorder %v249_v6, %v251_v9  ;;  %vm278_vm15 = vcmp.lt.s32.totalorder %v250_v7, %v252_v10  ;;  %v262_v21 = vand.u32 65535, %v261_v3 }
  0x92   :  { %266 = vmin.xlane.f32.xlu1 %v265_v8  ;;  %v277_v13 = vsel %vm276_vm14, %v249_v6, %v251_v9  ;;  %v279_v14 = vsel %vm278_vm15, %v250_v7, %v252_v10 }
  0x93   :  { %vm280_vm0 = vcmp.lt.s32.totalorder %v277_v13, %v253_v12  ;;  %v264_v23 = vcvt.s32.f32 %v262_v21 }
  0x94   :  { %v281_v15 = vsel %vm280_vm0, %v277_v13, %v253_v12 }
  0x95   :  { %vm282_vm1 = vcmp.lt.s32.totalorder %v281_v15, %v279_v14 }
  0x96   :  { %v283_v16 = vsel %vm282_vm1, %v281_v15, %v279_v14 }
  0x97   :  { %v285_v17 = vshra.s32 %v283_v16, 16  ;;  %v284_v26 = vand.u32 65535, %v283_v16 }
  0x99   :  { %v287_v20 = vcvt.s32.f32 %v285_v17  ;;  %v286_v28 = vcvt.s32.f32 %v284_v26 }
  0x9b   :  { %288 = vmin.xlane.f32.xlu1 %v287_v20 }
 0x105   :  { %v267_v22 = vpop.xlane.xlu1 %266 }
 0x106   :  { %vm268_vm2 = vcmp.eq.f32.partialorder %v265_v8, %v267_v22  ;;  %v273_v31 = vcvt.f32.s32 %v267_v22 }
 0x107   :  { %v269_v24 = vsel %vm268_vm2, %v264_v23, inf }
 0x108   :  { %270 = vmin.xlane.f32.xlu2 %v269_v24  ;;  %v274_v34 = vshll.u32 %v273_v31, 16 }
 0x10e   :  { %v289_v27 = vpop.xlane.xlu1 %288 }
 0x10f   :  { %vm290_vm3 = vcmp.eq.f32.partialorder %v287_v20, %v289_v27  ;;  %v295_v38 = vcvt.f32.s32 %v289_v27 }
 0x110   :  { %v291_v30 = vsel %vm290_vm3, %v286_v28, inf }
 0x111   :  { %292 = vmin.xlane.f32.xlu2 %v291_v30 }
 0x17b   :  { %v271_v33 = vpop.xlane.xlu2 %270 }
 0x17c   :  { %v272_v35 = vcvt.f32.s32 %v271_v33 }
 0x17e   :  { %v275_v36 = vadd.s32 %v274_v34, %v272_v35 }
 0x180   :  { %vm298_vm4 = vcmp.eq.s32.totalorder %v986_v49, %v275_v36  ;;  %vm299_vm5 = vcmp.eq.s32.totalorder %v989_v50, %v275_v36  ;;  %vm300_vm6 = vcmp.eq.s32.totalorder %v992_v51, %v275_v36  ;;  %vm301_vm7 = vcmp.eq.s32.totalorder %v995_v52, %v275_v36 }
 0x181   :  { %vm302_vm8 = vcmp.eq.s32.totalorder %v1000_v54, %v275_v36  ;;  %v1040_v40 = vsel %vm298_vm4, -3e+38, %v954_v11  ;;  %v1043_v43 = vsel %vm299_vm5, -3e+38, %v960_v19  ;;  %v1046_v44 = vsel %vm300_vm6, -3e+38, %v962_v25 }
 0x182   :  { %v1049_v45 = vsel %vm301_vm7, -3e+38, %v966_v32  ;;  %v318_v46 = vmax.f32 %v1040_v40, %v1046_v44  ;;  %v1054_v47 = vsel %vm302_vm8, -3e+38, %v970_v37  ;;  %v296_v19 = vshll.u32 %v295_v38, 16 }
 0x183   :  { %v319_v55 = vmax.f32 %v1043_v43, %v1049_v45 }
 0x184   :  { %v293_v48 = vpop.xlane.xlu2 %292  ;;  %v320_v56 = vmax.f32 %v318_v46, %v1054_v47 }
 0x185   :  { %v294_v57 = vcvt.f32.s32 %v293_v48 }
 0x186   :  { %v321_v58 = vmax.f32 %v320_v56, %v319_v55 }
 0x187   :  { %v297_v25 = vadd.s32 %v296_v19, %v294_v57 }
 0x188   :  { %322 = vmax.xlane.f32.xlu0 %v321_v58 }
 0x189   :  { %vm303_vm9 = vcmp.eq.s32.totalorder %v986_v49, %v297_v25  ;;  %vm304_vm10 = vcmp.eq.s32.totalorder %v989_v50, %v297_v25  ;;  %vm305_vm11 = vcmp.eq.s32.totalorder %v992_v51, %v297_v25  ;;  %vm306_vm12 = vcmp.eq.s32.totalorder %v995_v52, %v297_v25 }
 0x18a   :  { %vm307_vm13 = vcmp.eq.s32.totalorder %v1000_v54, %v297_v25  ;;  %v1065_v32 = vsel %vm303_vm9, -3e+38, %v958_v18  ;;  %v1068_v37 = vsel %vm304_vm10, -3e+38, %v974_v39  ;;  %v1071_v59 = vsel %vm305_vm11, -3e+38, %v964_v29 }
 0x18b   :  { %v1074_v60 = vsel %vm306_vm12, -3e+38, %v977_v41  ;;  %v324_v61 = vmax.f32 %v1065_v32, %v1071_v59  ;;  %v1079_v62 = vsel %vm307_vm13, -3e+38, %v979_v42 }
 0x18c   :  { %v325_v3 = vmax.f32 %v1068_v37, %v1074_v60 }
 0x18d   :  { %v326_v4 = vmax.f32 %v324_v61, %v1079_v62 }
 0x18f   :  { %v327_v6 = vmax.f32 %v326_v4, %v325_v3 }
 0x191   :  { %328 = vmax.xlane.f32.xlu1 %v327_v6 }
 0x1fb   :  { %v1084_v39 = vpop.xlane.xlu0 %322 }
 0x1fc   :  { %vm330_vm14 = vcmp.eq.f32.partialorder %v1040_v40, %v1084_v39  ;;  %vm331_vm15 = vcmp.eq.f32.partialorder %v1043_v43, %v1084_v39  ;;  %vm332_vm0 = vcmp.eq.f32.partialorder %v1046_v44, %v1084_v39  ;;  %vm333_vm1 = vcmp.eq.f32.partialorder %v1049_v45, %v1084_v39 }
 0x1fd   :  { %vm334_vm2 = vcmp.eq.f32.partialorder %v1054_v47, %v1084_v39  ;;  %v340_v29 = vsel %vm330_vm14, %v986_v49, 640  ;;  %v341_v41 = vsel %vm331_vm15, %v989_v50, 640  ;;  %v342_v42 = vsel %vm332_vm0, %v992_v51, 640 }
 0x1fe   :  { %v343_v7 = vsel %vm333_vm1, %v995_v52, 640  ;;  %vm350_vm3 = vcmp.lt.s32.totalorder %v340_v29, %v342_v42  ;;  %v344_v8 = vsel %vm334_vm2, %v1000_v54, 640 }
 0x1ff   :  { %v351_v9 = vsel %vm350_vm3, %v340_v29, %v342_v42  ;;  %vm352_vm4 = vcmp.lt.s32.totalorder %v341_v41, %v343_v7 }
 0x200   :  { %vm354_vm5 = vcmp.lt.s32.totalorder %v351_v9, %v344_v8  ;;  %v353_v10 = vsel %vm352_vm4, %v341_v41, %v343_v7 }
 0x201   :  { %v355_v12 = vsel %vm354_vm5, %v351_v9, %v344_v8 }
 0x202   :  { %vm356_vm6 = vcmp.lt.s32.totalorder %v355_v12, %v353_v10 }
 0x203   :  { %v357_v13 = vsel %vm356_vm6, %v355_v12, %v353_v10 }
 0x204   :  { %v1101_v14 = vpop.xlane.xlu1 %328  ;;  %v359_v15 = vshra.s32 %v357_v13, 16  ;;  %v358_v33 = vand.u32 65535, %v357_v13 }
 0x205   :  { %vm335_vm7 = vcmp.eq.f32.partialorder %v1065_v32, %v1101_v14  ;;  %vm336_vm8 = vcmp.eq.f32.partialorder %v1068_v37, %v1101_v14  ;;  %vm337_vm9 = vcmp.eq.f32.partialorder %v1071_v59, %v1101_v14  ;;  %vm338_vm10 = vcmp.eq.f32.partialorder %v1074_v60, %v1101_v14 }
 0x206   :  { %v361_v16 = vcvt.s32.f32 %v359_v15  ;;  %vm339_vm11 = vcmp.eq.f32.partialorder %v1079_v62, %v1101_v14  ;;  %v345_v17 = vsel %vm335_vm7, %v986_v49, 640  ;;  %v346_v20 = vsel %vm336_vm8, %v989_v50, 640 }
 0x207   :  { %v347_v21 = vsel %vm337_vm9, %v992_v51, 640  ;;  %v348_v22 = vsel %vm338_vm10, %v995_v52, 640  ;;  %v349_v23 = vsel %vm339_vm11, %v1000_v54, 640  ;;  %v360_v35 = vcvt.s32.f32 %v358_v33 }
 0x208   :  { %362 = vmin.xlane.f32.xlu2 %v361_v16  ;;  %vm372_vm12 = vcmp.lt.s32.totalorder %v345_v17, %v347_v21  ;;  %vm374_vm13 = vcmp.lt.s32.totalorder %v346_v20, %v348_v22 }
 0x209   :  { %v373_v24 = vsel %vm372_vm12, %v345_v17, %v347_v21  ;;  %v375_v26 = vsel %vm374_vm13, %v346_v20, %v348_v22 }
 0x20a   :  { %vm376_vm14 = vcmp.lt.s32.totalorder %v373_v24, %v349_v23 }
 0x20b   :  { %v377_v27 = vsel %vm376_vm14, %v373_v24, %v349_v23 }
 0x20c   :  { %vm378_vm15 = vcmp.lt.s32.totalorder %v377_v27, %v375_v26 }
 0x20d   :  { %v379_v28 = vsel %vm378_vm15, %v377_v27, %v375_v26 }
 0x20e   :  { %v381_v30 = vshra.s32 %v379_v28, 16  ;;  %v380_v38 = vand.u32 65535, %v379_v28 }
 0x210   :  { %v383_v31 = vcvt.s32.f32 %v381_v30  ;;  %v382_v48 = vcvt.s32.f32 %v380_v38 }
 0x212   :  { %384 = vmin.xlane.f32.xlu0 %v383_v31 }
 0x27b   :  { %v363_v34 = vpop.xlane.xlu2 %362 }
 0x27c   :  { %vm364_vm0 = vcmp.eq.f32.partialorder %v361_v16, %v363_v34  ;;  %v369_v56 = vcvt.f32.s32 %v363_v34 }
 0x27d   :  { %v365_v36 = vsel %vm364_vm0, %v360_v35, inf }
 0x27e   :  { %366 = vmin.xlane.f32.xlu1 %v365_v36  ;;  %v370_v57 = vshll.u32 %v369_v56, 16 }
 0x285   :  { %v385_v46 = vpop.xlane.xlu0 %384 }
 0x286   :  { %vm386_vm1 = vcmp.eq.f32.partialorder %v383_v31, %v385_v46  ;;  %v391_v6 = vcvt.f32.s32 %v385_v46 }
 0x287   :  { %v387_v55 = vsel %vm386_vm1, %v382_v48, inf }
 0x288   :  { %388 = vmin.xlane.f32.xlu2 %v387_v55  ;;  %v392_v8 = vshll.u32 %v391_v6, 16 }
 0x2f1   :  { %v367_v19 = vpop.xlane.xlu1 %366 }
 0x2f2   :  { %v368_v58 = vcvt.f32.s32 %v367_v19 }
 0x2f4   :  { %v371_v25 = vadd.s32 %v370_v57, %v368_v58 }
 0x2f6   :  { %vm394_vm2 = vcmp.eq.s32.totalorder %v986_v49, %v371_v25  ;;  %vm395_vm3 = vcmp.eq.s32.totalorder %v989_v50, %v371_v25  ;;  %vm396_vm4 = vcmp.eq.s32.totalorder %v992_v51, %v371_v25  ;;  %vm397_vm5 = vcmp.eq.s32.totalorder %v995_v52, %v371_v25 }
 0x2f7   :  { %vm398_vm6 = vcmp.eq.s32.totalorder %v1000_v54, %v371_v25  ;;  %v1124_v61 = vsel %vm394_vm2, -3e+38, %v1040_v40  ;;  %v1127_v3 = vsel %vm395_vm3, -3e+38, %v1043_v43  ;;  %v1130_v4 = vsel %vm396_vm4, -3e+38, %v1046_v44 }
 0x2f8   :  { %v1133_v29 = vsel %vm397_vm5, -3e+38, %v1049_v45  ;;  %v414_v41 = vmax.f32 %v1124_v61, %v1130_v4  ;;  %v1138_v42 = vsel %vm398_vm6, -3e+38, %v1054_v47 }
 0x2f9   :  { %v415_v40 = vmax.f32 %v1127_v3, %v1133_v29 }
 0x2fa   :  { %v416_v7 = vmax.f32 %v414_v41, %v1138_v42 }
 0x2fb   :  { %v389_v43 = vpop.xlane.xlu2 %388 }
 0x2fc   :  { %v390_v9 = vcvt.f32.s32 %v389_v43  ;;  %v417_v44 = vmax.f32 %v416_v7, %v415_v40 }
 0x2fe   :  { %v393_v10 = vadd.s32 %v392_v8, %v390_v9  ;;  %418 = vmax.xlane.f32.xlu0 %v417_v44 }
 0x300   :  { %vm399_vm7 = vcmp.eq.s32.totalorder %v986_v49, %v393_v10  ;;  %vm400_vm8 = vcmp.eq.s32.totalorder %v989_v50, %v393_v10  ;;  %vm401_vm9 = vcmp.eq.s32.totalorder %v992_v51, %v393_v10  ;;  %vm402_vm10 = vcmp.eq.s32.totalorder %v995_v52, %v393_v10 }
 0x301   :  { %vm403_vm11 = vcmp.eq.s32.totalorder %v1000_v54, %v393_v10  ;;  %v1149_v45 = vsel %vm399_vm7, -3e+38, %v1065_v32  ;;  %v1152_v47 = vsel %vm400_vm8, -3e+38, %v1068_v37  ;;  %v1155_v12 = vsel %vm401_vm9, -3e+38, %v1071_v59 }
 0x302   :  { %v1158_v13 = vsel %vm402_vm10, -3e+38, %v1074_v60  ;;  %v420_v15 = vmax.f32 %v1149_v45, %v1155_v12  ;;  %v1163_v16 = vsel %vm403_vm11, -3e+38, %v1079_v62 }
 0x303   :  { %v421_v17 = vmax.f32 %v1152_v47, %v1158_v13 }
 0x304   :  { %v422_v32 = vmax.f32 %v420_v15, %v1163_v16 }
 0x306   :  { %v423_v20 = vmax.f32 %v422_v32, %v421_v17 }
 0x308   :  { %424 = vmax.xlane.f32.xlu1 %v423_v20 }
 0x371   :  { %v1168_v37 = vpop.xlane.xlu0 %418 }
 0x372   :  { %vm426_vm12 = vcmp.eq.f32.partialorder %v1124_v61, %v1168_v37  ;;  %vm427_vm13 = vcmp.eq.f32.partialorder %v1127_v3, %v1168_v37  ;;  %vm428_vm14 = vcmp.eq.f32.partialorder %v1130_v4, %v1168_v37  ;;  %vm429_vm15 = vcmp.eq.f32.partialorder %v1133_v29, %v1168_v37 }
 0x373   :  { %vm430_vm0 = vcmp.eq.f32.partialorder %v1138_v42, %v1168_v37  ;;  %v436_v59 = vsel %vm426_vm12, %v986_v49, 640  ;;  %v437_v60 = vsel %vm427_vm13, %v989_v50, 640  ;;  %v438_v62 = vsel %vm428_vm14, %v992_v51, 640 }
 0x374   :  { %v439_v21 = vsel %vm429_vm15, %v995_v52, 640  ;;  %vm446_vm1 = vcmp.lt.s32.totalorder %v436_v59, %v438_v62  ;;  %v440_v22 = vsel %vm430_vm0, %v1000_v54, 640 }
 0x375   :  { %v447_v23 = vsel %vm446_vm1, %v436_v59, %v438_v62  ;;  %vm448_vm2 = vcmp.lt.s32.totalorder %v437_v60, %v439_v21 }
 0x376   :  { %vm450_vm3 = vcmp.lt.s32.totalorder %v447_v23, %v440_v22  ;;  %v449_v24 = vsel %vm448_vm2, %v437_v60, %v439_v21 }
 0x377   :  { %v451_v26 = vsel %vm450_vm3, %v447_v23, %v440_v22 }
 0x378   :  { %vm452_vm4 = vcmp.lt.s32.totalorder %v451_v26, %v449_v24 }
 0x379   :  { %v453_v27 = vsel %vm452_vm4, %v451_v26, %v449_v24 }
 0x37a   :  { %v455_v28 = vshra.s32 %v453_v27, 16  ;;  %v454_v58 = vand.u32 65535, %v453_v27 }
 0x37b   :  { %v1185_v30 = vpop.xlane.xlu1 %424 }
 0x37c   :  { %v457_v31 = vcvt.s32.f32 %v455_v28  ;;  %vm431_vm5 = vcmp.eq.f32.partialorder %v1149_v45, %v1185_v30  ;;  %vm432_vm6 = vcmp.eq.f32.partialorder %v1152_v47, %v1185_v30  ;;  %vm433_vm7 = vcmp.eq.f32.partialorder %v1155_v12, %v1185_v30 }
 0x37d   :  { %vm434_vm8 = vcmp.eq.f32.partialorder %v1158_v13, %v1185_v30  ;;  %vm435_vm9 = vcmp.eq.f32.partialorder %v1163_v16, %v1185_v30  ;;  %v441_v33 = vsel %vm431_vm5, %v986_v49, 640  ;;  %v442_v34 = vsel %vm432_vm6, %v989_v50, 640 }
 0x37e   :  { %458 = vmin.xlane.f32.xlu2 %v457_v31  ;;  %v443_v35 = vsel %vm433_vm7, %v992_v51, 640  ;;  %v444_v36 = vsel %vm434_vm8, %v995_v52, 640  ;;  %v445_v38 = vsel %vm435_vm9, %v1000_v54, 640  ;;  %v456_v6 = vcvt.s32.f32 %v454_v58 }
 0x37f   :  { %vm468_vm10 = vcmp.lt.s32.totalorder %v441_v33, %v443_v35  ;;  %vm470_vm11 = vcmp.lt.s32.totalorder %v442_v34, %v444_v36 }
 0x380   :  { %v469_v46 = vsel %vm468_vm10, %v441_v33, %v443_v35  ;;  %v471_v48 = vsel %vm470_vm11, %v442_v34, %v444_v36 }
 0x381   :  { %vm472_vm12 = vcmp.lt.s32.totalorder %v469_v46, %v445_v38 }
 0x382   :  { %v473_v55 = vsel %vm472_vm12, %v469_v46, %v445_v38 }
 0x383   :  { %vm474_vm13 = vcmp.lt.s32.totalorder %v473_v55, %v471_v48 }
 0x384   :  { %v475_v56 = vsel %vm474_vm13, %v473_v55, %v471_v48 }
 0x385   :  { %v477_v19 = vshra.s32 %v475_v56, 16  ;;  %v476_v40 = vand.u32 65535, %v475_v56 }
 0x387   :  { %v479_v57 = vcvt.s32.f32 %v477_v19  ;;  %v478_v43 = vcvt.s32.f32 %v476_v40 }
 0x389   :  { %480 = vmin.xlane.f32.xlu0 %v479_v57 }
 0x3f1   :  { %v459_v25 = vpop.xlane.xlu2 %458 }
 0x3f2   :  { %vm460_vm14 = vcmp.eq.f32.partialorder %v457_v31, %v459_v25  ;;  %v465_v9 = vcvt.f32.s32 %v459_v25 }
 0x3f3   :  { %v461_v41 = vsel %vm460_vm14, %v456_v6, inf }
 0x3f4   :  { %462 = vmin.xlane.f32.xlu1 %v461_v41  ;;  %v466_v10 = vshll.u32 %v465_v9, 16 }
 0x3fc   :  { %v481_v7 = vpop.xlane.xlu0 %480 }
 0x3fd   :  { %vm482_vm15 = vcmp.eq.f32.partialorder %v479_v57, %v481_v7  ;;  %v487_v21 = vcvt.f32.s32 %v481_v7 }
 0x3fe   :  { %v483_v8 = vsel %vm482_vm15, %v478_v43, inf }
 0x3ff   :  { %484 = vmin.xlane.f32.xlu2 %v483_v8  ;;  %v488_v26 = vshll.u32 %v487_v21, 16 }
 0x467   :  { %v463_v44 = vpop.xlane.xlu1 %462 }
 0x468   :  { %v464_v15 = vcvt.f32.s32 %v463_v44 }
 0x46a   :  { %v467_v17 = vadd.s32 %v466_v10, %v464_v15 }
 0x46c   :  { %vm490_vm0 = vcmp.eq.s32.totalorder %v986_v49, %v467_v17  ;;  %vm491_vm1 = vcmp.eq.s32.totalorder %v989_v50, %v467_v17  ;;  %vm492_vm2 = vcmp.eq.s32.totalorder %v992_v51, %v467_v17  ;;  %vm493_vm3 = vcmp.eq.s32.totalorder %v995_v52, %v467_v17 }
 0x46d   :  { %vm494_vm4 = vcmp.eq.s32.totalorder %v1000_v54, %v467_v17  ;;  %v1208_v32 = vsel %vm490_vm0, -3e+38, %v1124_v61  ;;  %v1211_v20 = vsel %vm491_vm1, -3e+38, %v1127_v3  ;;  %v1214_v59 = vsel %vm492_vm2, -3e+38, %v1130_v4 }
 0x46e   :  { %v1217_v60 = vsel %vm493_vm3, -3e+38, %v1133_v29  ;;  %v510_v62 = vmax.f32 %v1208_v32, %v1214_v59  ;;  %v1222_v22 = vsel %vm494_vm4, -3e+38, %v1138_v42 }
 0x46f   :  { %v511_v61 = vmax.f32 %v1211_v20, %v1217_v60 }
 0x470   :  { %v512_v23 = vmax.f32 %v510_v62, %v1222_v22 }
 0x472   :  { %v485_v3 = vpop.xlane.xlu2 %484  ;;  %v513_v24 = vmax.f32 %v512_v23, %v511_v61 }
 0x473   :  { %v486_v4 = vcvt.f32.s32 %v485_v3 }
 0x474   :  { %514 = vmax.xlane.f32.xlu0 %v513_v24 }
 0x475   :  { %v489_v27 = vadd.s32 %v488_v26, %v486_v4 }
 0x477   :  { %vm495_vm5 = vcmp.eq.s32.totalorder %v986_v49, %v489_v27  ;;  %vm496_vm6 = vcmp.eq.s32.totalorder %v989_v50, %v489_v27  ;;  %vm497_vm7 = vcmp.eq.s32.totalorder %v992_v51, %v489_v27  ;;  %vm498_vm8 = vcmp.eq.s32.totalorder %v995_v52, %v489_v27 }
 0x478   :  { %vm499_vm9 = vcmp.eq.s32.totalorder %v1000_v54, %v489_v27  ;;  %v1233_v29 = vsel %vm495_vm5, -3e+38, %v1149_v45  ;;  %v1236_v42 = vsel %vm496_vm6, -3e+38, %v1152_v47  ;;  %v1239_v28 = vsel %vm497_vm7, -3e+38, %v1155_v12 }
 0x479   :  { %v1242_v31 = vsel %vm498_vm8, -3e+38, %v1158_v13  ;;  %v516_v33 = vmax.f32 %v1233_v29, %v1239_v28  ;;  %v1247_v34 = vsel %vm499_vm9, -3e+38, %v1163_v16 }
 0x47a   :  { %v517_v35 = vmax.f32 %v1236_v42, %v1242_v31 }
 0x47b   :  { %v518_v45 = vmax.f32 %v516_v33, %v1247_v34 }
 0x47d   :  { %v519_v36 = vmax.f32 %v518_v45, %v517_v35 }
 0x47f   :  { %520 = vmax.xlane.f32.xlu1 %v519_v36 }
 0x487   :  { %104 = vmax.xlane.f32.xlu1 %v954_v11 }
 0x4e7   :  { %v1253_v47 = vpop.xlane.xlu0 %514 }
 0x4e8   :  { %vm522_vm10 = vcmp.eq.f32.partialorder %v1208_v32, %v1253_v47  ;;  %vm523_vm11 = vcmp.eq.f32.partialorder %v1211_v20, %v1253_v47  ;;  %vm524_vm12 = vcmp.eq.f32.partialorder %v1214_v59, %v1253_v47  ;;  %vm525_vm13 = vcmp.eq.f32.partialorder %v1217_v60, %v1253_v47 }
 0x4e9   :  { %vm526_vm14 = vcmp.eq.f32.partialorder %v1222_v22, %v1253_v47  ;;  %v532_v12 = vsel %vm522_vm10, %v986_v49, 640  ;;  %v533_v11 = vsel %vm523_vm11, %v989_v50, 640  ;;  %v534_v13 = vsel %vm524_vm12, %v992_v51, 640 }
 0x4ea   :  { %v535_v16 = vsel %vm525_vm13, %v995_v52, 640  ;;  %vm542_vm15 = vcmp.lt.s32.totalorder %v532_v12, %v534_v13  ;;  %v536_v38 = vsel %vm526_vm14, %v1000_v54, 640  ;;  %vm21_vm12 = vcmask 7168  }
 0x4eb   :  { %v543_v46 = vsel %vm542_vm15, %v532_v12, %v534_v13  ;;  %vm544_vm0 = vcmp.lt.s32.totalorder %v533_v11, %v535_v16 }
 0x4ec   :  { %vm546_vm1 = vcmp.lt.s32.totalorder %v543_v46, %v536_v38  ;;  %v545_v48 = vsel %vm544_vm0, %v533_v11, %v535_v16 }
 0x4ed   :  { %v547_v55 = vsel %vm546_vm1, %v543_v46, %v536_v38 }
 0x4ee   :  { %vm548_vm2 = vcmp.lt.s32.totalorder %v547_v55, %v545_v48 }
 0x4ef   :  { %v549_v56 = vsel %vm548_vm2, %v547_v55, %v545_v48 }
 0x4f0   :  { %v551_v19 = vshra.s32 %v549_v56, 16  ;;  %v550_v13 = vand.u32 65535, %v549_v56 }
 0x4f2   :  { %v1270_v57 = vpop.xlane.xlu1 %520  ;;  %v553_v58 = vcvt.s32.f32 %v551_v19  ;;  %v552_v38 = vcvt.s32.f32 %v550_v13 }
 0x4f3   :  { %vm527_vm3 = vcmp.eq.f32.partialorder %v1233_v29, %v1270_v57  ;;  %vm528_vm4 = vcmp.eq.f32.partialorder %v1236_v42, %v1270_v57  ;;  %vm529_vm5 = vcmp.eq.f32.partialorder %v1239_v28, %v1270_v57  ;;  %vm530_vm6 = vcmp.eq.f32.partialorder %v1242_v31, %v1270_v57 }
 0x4f4   :  { %554 = vmin.xlane.f32.xlu2 %v553_v58  ;;  %vm531_vm7 = vcmp.eq.f32.partialorder %v1247_v34, %v1270_v57  ;;  %v537_v25 = vsel %vm527_vm3, %v986_v49, 640  ;;  %v538_v6 = vsel %vm528_vm4, %v989_v50, 640  ;;  %v539_v41 = vsel %vm529_vm5, %v992_v51, 640 }
 0x4f5   :  { %v540_v40 = vsel %vm530_vm6, %v995_v52, 640  ;;  %vm564_vm8 = vcmp.lt.s32.totalorder %v537_v25, %v539_v41  ;;  %v541_v7 = vsel %vm531_vm7, %v1000_v54, 640 }
 0x4f6   :  { %v565_v43 = vsel %vm564_vm8, %v537_v25, %v539_v41  ;;  %vm566_vm9 = vcmp.lt.s32.totalorder %v538_v6, %v540_v40 }
 0x4f7   :  { %vm568_vm10 = vcmp.lt.s32.totalorder %v565_v43, %v541_v7  ;;  %v567_v8 = vsel %vm566_vm9, %v538_v6, %v540_v40 }
 0x4f8   :  { %v569_v9 = vsel %vm568_vm10, %v565_v43, %v541_v7 }
 0x4f9   :  { %vm570_vm11 = vcmp.lt.s32.totalorder %v569_v9, %v567_v8 }
 0x4fa   :  { %v1287_v44 = vpop.xlane.xlu1 %104  ;;  %v571_v10 = vsel %vm570_vm11, %v569_v9, %v567_v8 }
 0x4fb   :  { %v573_v15 = vshra.s32 %v571_v10, 16  ;;  %v1291_v17 = vsub.f32 %v931_v0, %v1287_v44  ;;  %v1295_v62 = vsub.f32 %v936_v1, %v1287_v44  ;;  %v900_v1 = vmov -3e+38  }
 0x4fc   :  { %106 = vmax.xlane.f32.xlu2 %v958_v18  ;;  %22 = vst.msk [vmem:[#allocation2] sm:$0xff] %vm21_vm12, %v900_v1  ;;  %v901_v18 = vmov 0.0   ;;  %v572_v55 = vand.u32 65535, %v571_v10 }
 0x4fd   :  { %v575_v21 = vcvt.s32.f32 %v573_v15  ;;  %v118_v61 = vmul.f32 1.442695, %v1291_v17  ;;  %v120_v23 = vmul.f32 1.442695, %v1295_v62  ;;  %23 = vst.msk [vmem:[#allocation2 + $0x8] sm:$0xff] %vm21_vm12, %v900_v1 }
 0x4fe   :  { %24 = vst.msk [vmem:[#allocation3] sm:$0xff] %vm21_vm12, %v901_v18 }
 0x4ff   :  { %576 = vmin.xlane.f32.xlu0 %v575_v21  ;;  %856 = vpow2.f32 %v118_v61  ;;  %25 = vst.msk [vmem:[#allocation3 + $0x8] sm:$0xff] %vm21_vm12, %v901_v18 }
 0x500   :  { %858 = vpow2.f32 %v120_v23  ;;  %26 = vst.msk [vmem:[#allocation4] sm:$0xff] %vm21_vm12, %v901_v18 }
 0x501   :  { %27 = vst.msk [vmem:[#allocation4 + $0x8] sm:$0xff] %vm21_vm12, %v901_v18 }
 0x503   :  { %v102_v26 = vld [vmem:[#allocation2] sm:$0xff] }
 0x504   :  { %v108_v4 = vsub.f32 %v102_v26, %v1287_v44  ;;  %159 = vst.msk [vmem:[#allocation2] sm:$0xff] %vm21_vm12, %v1287_v44  ;;  %v103_v48 = vld [vmem:[#allocation2 + $0x8] sm:$0xff] }
 0x505   :  { %v1300_v3 = vpop.eup %856  ;;  %v126_v33 = vld [vmem:[#allocation3] sm:$0xff] }
 0x506   :  { %v1302_v24 = vpop.eup %858  ;;  %v110_v27 = vmul.f32 1.442695, %v108_v4  ;;  %v140_v35 = vmul.f32 %v126_v33, %v108_v4  ;;  %v127_v9 = vld [vmem:[#allocation3 + $0x8] sm:$0xff] }
 0x507   :  { %v132_v0 = vadd.f32 %v1302_v24, %v1300_v3  ;;  %v128_v45 = vld [vmem:[#allocation4] sm:$0xff] }
 0x508   :  { %860 = vpow2.f32 %v110_v27  ;;  %v142_v12 = vadd.f32 %v140_v35, %v128_v45  ;;  %v147_v45 = vmul.f32 %v1302_v24, %v1295_v62 }
 0x509   :  { %133 = vadd.xlane.f32.xlu2 %v132_v0 }
 0x50e   :  { %v861_v36 = vpop.eup %860 }
 0x50f   :  { %v1315_v11 = vmul.f32 %v861_v36, %v142_v12  ;;  %v130_v10 = vmul.f32 %v861_v36, %v126_v33  ;;  %v146_v33 = vmul.f32 %v1300_v3, %v1291_v17 }
 0x511   :  { %v150_v36 = vadd.f32 %v147_v45, %v146_v33 }
 0x567   :  { %v555_v16 = vpop.xlane.xlu2 %554 }
 0x568   :  { %vm556_vm13 = vcmp.eq.f32.partialorder %v553_v58, %v555_v16  ;;  %v574_v58 = vcvt.s32.f32 %v572_v55  ;;  %v561_v12 = vcvt.f32.s32 %v555_v16 }
 0x569   :  { %v557_v46 = vsel %vm556_vm13, %v552_v38, inf }
 0x56a   :  { %558 = vmin.xlane.f32.xlu0 %v557_v46  ;;  %v562_v38 = vshll.u32 %v561_v12, 16 }
 0x56f   :  { %v1317_v19 = vpop.xlane.xlu2 %106 }
 0x570   :  { %v116_v25 = vsub.f32 %v941_v2, %v1317_v19  ;;  %v117_v6 = vsub.f32 %v948_v5, %v1317_v19  ;;  %v109_v41 = vsub.f32 %v103_v48, %v1317_v19  ;;  %160 = vst.msk [vmem:[#allocation2 + $0x8] sm:$0xff] %vm21_vm12, %v1317_v19  ;;  %v129_v5 = vld [vmem:[#allocation4 + $0x8] sm:$0xff]  ;;  %v902_v48 = vmov 0  }
 0x571   :  { %817 = vset.pattern.permute.xlu2 %v902_v48  ;;  %829 = vset.pattern.permute.xlu1 %v902_v48 }
 0x572   :  { %v1326_v56 = vpop.xlane.xlu0 %576  ;;  %v122_v40 = vmul.f32 1.442695, %v116_v25  ;;  %v124_v7 = vmul.f32 1.442695, %v117_v6  ;;  %v112_v43 = vmul.f32 1.442695, %v109_v41  ;;  %v141_v2 = vmul.f32 %v127_v9, %v109_v41  ;;  %823 = vset.pattern.permute.xlu0 %v902_v48 }
 0x573   :  { %vm578_vm14 = vcmp.eq.f32.partialorder %v575_v21, %v1326_v56  ;;  %v643_v48 = vsub.f32 %v1270_v57, %v1317_v19 }
 0x574   :  { %v579_v8 = vsel %vm578_vm14, %v574_v58, inf  ;;  %862 = vpow2.f32 %v122_v40  ;;  %v143_v0 = vadd.f32 %v141_v2, %v129_v5 }
 0x575   :  { %580 = vmin.xlane.f32.xlu1 %v579_v8  ;;  %864 = vpow2.f32 %v124_v7 }
 0x576   :  { %866 = vpow2.f32 %v112_v43 }
 0x57a   :  { %v863_v15 = vpop.eup %862 }
 0x57b   :  { %v865_v61 = vpop.eup %864  ;;  %v148_v23 = vmul.f32 %v863_v15, %v116_v25 }
 0x57c   :  { %v867_v1 = vpop.eup %866  ;;  %v134_v18 = vpop.xlane.xlu2 %133  ;;  %v135_v26 = vadd.f32 %v865_v61, %v863_v15  ;;  %v149_v4 = vmul.f32 %v865_v61, %v117_v6  ;;  %v619_v61 = vsub.f32 %v1017_v63, %v1317_v19 }
 0x57d   :  { %v1329_v27 = vadd.f32 %v134_v18, %v130_v10  ;;  %v1331_v21 = vmul.f32 %v867_v1, %v143_v0  ;;  %v131_v8 = vmul.f32 %v867_v1, %v127_v9  ;;  %v618_v1 = vsub.f32 %v997_v53, %v1287_v44 }
 0x57e   :  { %136 = vadd.xlane.f32.xlu0 %v135_v26  ;;  %v153_v35 = vadd.f32 %v149_v4, %v148_v23 }
 0x57f   :  { %161 = vst.msk [vmem:[#allocation3] sm:$0xff] %vm21_vm12, %v1329_v27  ;;  %868 = vrcp.f32 %v1329_v27  ;;  %v179_v5 = vand.u32 2147483648, %v1329_v27  ;;  %vm173_vm5 = vweird.f32 %v1329_v27  ;;  %v177_v15 = vand.u32 2147483647, %v1329_v27 }
 0x580   :  { %870 = vlog2.f32 %v1329_v27  ;;  %v620_v53 = vmul.f32 1.442695, %v618_v1 }
 0x581   :  { %v180_v26 = vor.u32 1.1754944e-38, %v179_v5  ;;  %vm178_vm7 = vcmp.eq.f32.partialorder %v177_v15, 8.507059e+37 }
 0x585   :  { %v869_v25 = vpop.eup %868 }
 0x586   :  { %151 = vadd.xlane.f32.xlu0 %v150_v36  ;;  %v169_v40 = vmul.f32 %v869_v25, %v1329_v27  ;;  %vm174_vm4 = vweird.f32 %v869_v25  ;;  %v871_v18 = vpop.eup %870  ;;  %v622_v36 = vmul.f32 1.442695, %v619_v61  ;;  %v583_v61 = vcvt.f32.s32 %v1326_v56 }
 0x587   :  { %vm175_vm6 = vmor %vm173_vm5, %vm174_vm4  ;;  %v1376_v63 = vmul.f32 0.6931472, %v871_v18  ;;  %vm697_vm4 = vcmp.eq.s32.totalorder %v986_v49, 3  ;;  %vm710_vm5 = vcmp.eq.s32.totalorder %v986_v49, 4 }
 0x588   :  { %v170_v43 = vsub.f32 1.0, %v169_v40 }
 0x58a   :  { %v171_v2 = vmul.f32 %v869_v25, %v170_v43 }
 0x5dd   :  { %v559_v13 = vpop.xlane.xlu0 %558 }
 0x5de   :  { %v560_v46 = vcvt.f32.s32 %v559_v13 }
 0x5e0   :  { %v563_v55 = vadd.s32 %v562_v38, %v560_v46 }
 0x5e2   :  { %vm586_vm15 = vcmp.eq.s32.totalorder %v986_v49, %v563_v55  ;;  %vm587_vm0 = vcmp.eq.s32.totalorder %v989_v50, %v563_v55  ;;  %vm588_vm1 = vcmp.eq.s32.totalorder %v992_v51, %v563_v55  ;;  %vm589_vm2 = vcmp.eq.s32.totalorder %v995_v52, %v563_v55 }
 0x5e3   :  { %vm590_vm3 = vcmp.eq.s32.totalorder %v1000_v54, %v563_v55  ;;  %v596_v17 = vsel %vm586_vm15, -3e+38, %v1208_v32  ;;  %v597_v62 = vsel %vm587_vm0, -3e+38, %v1211_v20  ;;  %v598_v3 = vsel %vm588_vm1, -3e+38, %v1214_v59 }
 0x5e4   :  { %v599_v24 = vsel %vm589_vm2, -3e+38, %v1217_v60  ;;  %v606_v16 = vmax.f32 %v596_v17, %v598_v3  ;;  %v600_v6 = vsel %vm590_vm3, -3e+38, %v1222_v22  ;;  %v206_v20 = vld [vmem:[%s1502_s1] sm:$0xff]  ;;  %v207_v60 = vld [vmem:[%s1502_s1 + $0x8] sm:$0xff]  ;;  %v172_v22 = vadd.f32 %v869_v25, %v171_v2 }
 0x5e5   :  { %v607_v41 = vmax.f32 %v597_v62, %v599_v24  ;;  %v208_v9 = vsub.f32 %v206_v20, %v1287_v44  ;;  %v209_v10 = vsub.f32 %v207_v60, %v1317_v19  ;;  %v642_v62 = vsub.f32 %v1253_v47, %v1287_v44 }
 0x5e6   :  { %v608_v58 = vmax.f32 %v606_v16, %v600_v6  ;;  %v176_v23 = vsel %vm175_vm6, %v869_v25, %v172_v22  ;;  %v646_v25 = vmul.f32 1.442695, %v643_v48  ;;  %vm671_vm2 = vcmp.eq.s32.totalorder %v986_v49, 1 }
 0x5e7   :  { %v210_v0 = vmul.f32 1.442695, %v208_v9  ;;  %v1374_v12 = vsel %vm178_vm7, %v180_v26, %v176_v23  ;;  %v644_v40 = vmul.f32 1.442695, %v642_v62  ;;  %vm684_vm3 = vcmp.eq.s32.totalorder %v986_v49, 2 }
 0x5e8   :  { %v609_v7 = vmax.f32 %v608_v58, %v607_v41  ;;  %v581_v15 = vpop.xlane.xlu1 %580  ;;  %vm723_vm6 = vcmp.eq.s32.totalorder %v986_v49, 5  ;;  %vm736_vm7 = vcmp.eq.s32.totalorder %v986_v49, 6 }
 0x5e9   :  { %v582_v23 = vcvt.f32.s32 %v581_v15  ;;  %v752_v15 = vld [vmem:[%s1504_s2 + $0x18] sm:$0xff] }
 0x5ea   :  { %610 = vmax.xlane.f32.xlu1 %v609_v7 }
 0x5f1   :  { %v137_v32 = vpop.xlane.xlu0 %136 }
 0x5f2   :  { %v1354_v59 = vadd.f32 %v137_v32, %v131_v8  ;;  %154 = vadd.xlane.f32.xlu1 %v153_v35  ;;  %v212_v35 = vmul.f32 1.442695, %v209_v10 }
 0x5f4   :  { %162 = vst.msk [vmem:[#allocation3 + $0x8] sm:$0xff] %vm21_vm12, %v1354_v59  ;;  %872 = vrcp.f32 %v1354_v59  ;;  %v192_v17 = vand.u32 2147483647, %v1354_v59  ;;  %vm188_vm9 = vweird.f32 %v1354_v59 }
 0x5f5   :  { %874 = vpow2.f32 %v210_v0  ;;  %v584_v0 = vshll.u32 %v583_v61, 16  ;;  %v751_v61 = vld [vmem:[%s1504_s2 + $0x10] sm:$0xff] }
 0x5f6   :  { %876 = vpow2.f32 %v212_v35  ;;  %vm193_vm11 = vcmp.eq.f32.partialorder %v192_v17, 8.507059e+37 }
 0x5f7   :  { %878 = vpow2.f32 %v622_v36  ;;  %v585_v1 = vadd.s32 %v584_v0, %v582_v23  ;;  %v750_v23 = vld [vmem:[%s1504_s2 + $0x8] sm:$0xff]  ;;  %v749_v0 = vld [vmem:[%s1504_s2] sm:$0xff] }
 0x5f8   :  { %880 = vpow2.f32 %v620_v53 }
 0x5f9   :  { %v152_v4 = vpop.xlane.xlu0 %151  ;;  %882 = vpow2.f32 %v646_v25  ;;  %vm591_vm13 = vcmp.eq.s32.totalorder %v986_v49, %v585_v1  ;;  %vm593_vm14 = vcmp.eq.s32.totalorder %v992_v51, %v585_v1  ;;  %vm592_vm15 = vcmp.eq.s32.totalorder %v989_v50, %v585_v1 }
 0x5fa   :  { %v873_v33 = vpop.eup %872  ;;  %v156_v45 = vadd.f32 %v152_v4, %v1315_v11  ;;  %v194_v11 = vand.u32 2147483648, %v1354_v59  ;;  %884 = vpow2.f32 %v644_v40  ;;  %v601_v18 = vsel %vm591_vm13, -3e+38, %v1233_v29 }
 0x5fb   :  { %v184_v27 = vmul.f32 %v873_v33, %v1354_v59  ;;  %vm189_vm8 = vweird.f32 %v873_v33  ;;  %v875_v24 = vpop.eup %874  ;;  %v603_v26 = vsel %vm593_vm14, -3e+38, %v1239_v28  ;;  %vm594_vm0 = vcmp.eq.s32.totalorder %v995_v52, %v585_v1 }
 0x5fc   :  { %163 = vst.msk [vmem:[#allocation4] sm:$0xff] %vm21_vm12, %v156_v45  ;;  %v1380_v13 = vmul.f32 %v1374_v12, %v156_v45  ;;  %vm190_vm10 = vmor %vm188_vm9, %vm189_vm8  ;;  %v195_v16 = vor.u32 1.1754944e-38, %v194_v11  ;;  %v877_v6 = vpop.eup %876  ;;  %v214_v7 = vmul.f32 %v875_v24, %v1374_v12  ;;  %vm595_vm1 = vcmp.eq.s32.totalorder %v1000_v54, %v585_v1 }
 0x5fd   :  { %v185_v38 = vsub.f32 1.0, %v184_v27  ;;  %v879_v58 = vpop.eup %878  ;;  %v612_v4 = vmax.f32 %v601_v18, %v603_v26  ;;  %v602_v56 = vsel %vm592_vm15, -3e+38, %v1236_v42  ;;  %v604_v35 = vsel %vm594_vm0, -3e+38, %v1242_v31 }
 0x5fe   :  { %v204_v46 = vsub.f32 %v1376_v63, %v1380_v13  ;;  %v881_v8 = vpop.eup %880  ;;  %v613_v36 = vmax.f32 %v602_v56, %v604_v35  ;;  %v627_v29 = vsub.f32 %v1101_v14, %v1317_v19  ;;  %v626_v50 = vsub.f32 %v1084_v39, %v1287_v44  ;;  %v764_v13 = vld [vmem:[%s1504_s2 + $0x78] sm:$0xff] }
 0x5ff   :  { %v186_v55 = vmul.f32 %v873_v33, %v185_v38  ;;  %v624_v32 = vmul.f32 %v881_v8, %v1374_v12  ;;  %v883_v60 = vpop.eup %882  ;;  %v635_v54 = vsub.f32 %v1185_v30, %v1317_v19  ;;  %v634_v42 = vsub.f32 %v1168_v37, %v1287_v44  ;;  %769 = vmatpush.msra.mxu0 %v764_v13 }
 0x600   :  { %v885_v9 = vpop.eup %884  ;;  %v630_v52 = vmul.f32 1.442695, %v627_v29  ;;  %v628_v28 = vmul.f32 1.442695, %v626_v50  ;;  %798 = vmatpush.msra.mxu1 %v764_v13 }
 0x601   :  { %v187_v3 = vadd.f32 %v873_v33, %v186_v55  ;;  %v648_v5 = vmul.f32 %v885_v9, %v1374_v12  ;;  %v638_v31 = vmul.f32 1.442695, %v635_v54  ;;  %v636_v27 = vmul.f32 1.442695, %v634_v42  ;;  %v755_v9 = vld [vmem:[%s1504_s2 + $0x30] sm:$0xff] }
 0x602   :  { %886 = vpow2.f32 %v630_v52 }
 0x603   :  { %v191_v41 = vsel %vm190_vm10, %v873_v33, %v187_v3  ;;  %v605_v33 = vsel %vm595_vm1, -3e+38, %v1247_v34  ;;  %888 = vpow2.f32 %v628_v28 }
 0x604   :  { %v1391_v57 = vsel %vm193_vm11, %v195_v16, %v191_v41  ;;  %v614_v45 = vmax.f32 %v612_v4, %v605_v33  ;;  %890 = vpow2.f32 %v638_v31 }
 0x605   :  { %v215_v43 = vmul.f32 %v877_v6, %v1391_v57  ;;  %v625_v47 = vmul.f32 %v879_v58, %v1391_v57  ;;  %v649_v22 = vmul.f32 %v883_v60, %v1391_v57  ;;  %892 = vpow2.f32 %v636_v27  ;;  %v757_v60 = vld [vmem:[%s1504_s2 + $0x40] sm:$0xff] }
 0x606   :  { %v615_v51 = vmax.f32 %v614_v45, %v613_v36  ;;  %894 = vlog2.f32 %v1354_v59 }
 0x607   :  { %v818_v2 = vpack.i.bf16 %v215_v43, %v214_v7  ;;  %v830_v20 = vpack.i.bf16 %v625_v47, %v624_v32  ;;  %v845_v10 = vpack.i.bf16 %v649_v22, %v648_v5  ;;  %v756_v22 = vld [vmem:[%s1504_s2 + $0x38] sm:$0xff]  ;;  %v754_v5 = vld [vmem:[%s1504_s2 + $0x28] sm:$0xff] }
 0x608   :  { %v887_v34 = vpop.eup %886 }
 0x609   :  { %819 = vperm.xlu2 %817, %v818_v2   ;;  %v633_v53 = vmul.f32 %v887_v34, %v1391_v57  ;;  %v889_v38 = vpop.eup %888 }
 0x60a   :  { %v632_v14 = vmul.f32 %v889_v38, %v1374_v12  ;;  %v891_v11 = vpop.eup %890 }
 0x60b   :  { %831 = vperm.xlu1 %829, %v830_v20   ;;  %v641_v48 = vmul.f32 %v891_v11, %v1391_v57  ;;  %v893_v30 = vpop.eup %892  ;;  %v758_v20 = vld [vmem:[%s1504_s2 + $0x48] sm:$0xff] }
 0x60c   :  { %v835_v39 = vpack.i.bf16 %v633_v53, %v632_v14  ;;  %v640_v55 = vmul.f32 %v893_v30, %v1374_v12  ;;  %v895_v62 = vpop.eup %894 }
 0x60d   :  { %v201_v16 = vmul.f32 0.6931472, %v895_v62 }
 0x60e   :  { %v840_v17 = vpack.i.bf16 %v641_v48, %v640_v55 }
 0x613   :  { %846 = vperm.xlu1 %829, %v845_v10   ;;  %v753_v10 = vld [vmem:[%s1504_s2 + $0x20] sm:$0xff] }
 0x632   :  { %616 = vmax.xlane.f32.xlu2 %v615_v51 }
 0x64a   :  { %836 = vperm.xlu2 %817, %v835_v39  }
 0x652   :  { %841 = vperm.xlu2 %817, %v840_v17  }
 0x65d   :  { %v611_v37 = vpop.xlane.xlu1 %610 }
 0x65e   :  { %v650_v40 = vsub.f32 %v611_v37, %v1287_v44  ;;  %v763_v44 = vld [vmem:[%s1504_s2 + $0x70] sm:$0xff] }
 0x65f   :  { %770 = vmatpush.msra.mxu0 %v763_v44  ;;  %799 = vmatpush.msra.mxu1 %v763_v44 }
 0x660   :  { %v652_v59 = vmul.f32 1.442695, %v650_v40 }
 0x662   :  { %896 = vpow2.f32 %v652_v59 }
 0x663   :  { %v1429_v58 = vpop.permute.xlu2 %819 }
 0x664   :  { %v822_v26 = vunpack.i.h.bf16 %v1429_v58  ;;  %v821_v4 = vunpack.i.l.bf16 %v1429_v58 }
 0x665   :  { %v155_v3 = vpop.xlane.xlu1 %154 }
 0x666   :  { %v157_v24 = vadd.f32 %v155_v3, %v1331_v21 }
 0x668   :  { %164 = vst.msk [vmem:[#allocation4 + $0x8] sm:$0xff] %vm21_vm12, %v157_v24  ;;  %v203_v25 = vmul.f32 %v1391_v57, %v157_v24  ;;  %v897_v47 = vpop.eup %896  ;;  %vm658_vm12 = vcmp.eq.s32.totalorder %v986_v49, 0 }
 0x669   :  { %v656_v2 = vmul.f32 %v897_v47, %v1374_v12  ;;  %v761_v12 = vld [vmem:[%s1504_s2 + $0x60] sm:$0xff]  ;;  %v670_v45 = vsel %vm658_vm12, %v822_v26, 0.0  ;;  %v669_v36 = vsel %vm658_vm12, %v821_v4, 0.0 }
 0x66a   :  { %v205_v6 = vsub.f32 %v201_v16, %v203_v25 }
 0x66c   :  { %v824_v41 = vpack.i.bf16 %v205_v6, %v204_v46  ;;  %v760_v46 = vld [vmem:[%s1504_s2 + $0x58] sm:$0xff]  ;;  %v855_v6 = vld [vmem:[%s1503_s3] ss:$0 sm:$0xff] }
 0x66e   :  { %825 = vperm.xlu0 %823, %v824_v41  }
 0x67d   :  { %v832_v33 = vpop.permute.xlu1 %831 }
 0x67e   :  { %v834_v50 = vunpack.i.h.bf16 %v832_v33  ;;  %v833_v52 = vunpack.i.l.bf16 %v832_v33 }
 0x685   :  { %v847_v38 = vpop.permute.xlu1 %846 }
 0x686   :  { %v849_v30 = vunpack.i.h.bf16 %v847_v38  ;;  %v848_v55 = vunpack.i.l.bf16 %v847_v38 }
 0x6a5   :  { %v617_v7 = vpop.xlane.xlu2 %616 }
 0x6a6   :  { %v651_v43 = vsub.f32 %v617_v7, %v1317_v19  ;;  %v762_v19 = vld [vmem:[%s1504_s2 + $0x68] sm:$0xff] }
 0x6a7   :  { %771 = vmatpush.msra.mxu0 %v762_v19  ;;  %800 = vmatpush.msra.mxu1 %v762_v19 }
 0x6a8   :  { %v654_v21 = vmul.f32 1.442695, %v651_v43 }
 0x6a9   :  { %772 = vmatpush.msra.mxu0 %v761_v12  ;;  %801 = vmatpush.msra.mxu1 %v761_v12 }
 0x6aa   :  { %898 = vpow2.f32 %v654_v21 }
 0x6ab   :  { %773 = vmatpush.msra.mxu0 %v760_v46  ;;  %802 = vmatpush.msra.mxu1 %v760_v46 }
 0x6ad   :  { %v837_v1 = vpop.permute.xlu2 %836 }
 0x6ae   :  { %v839_v31 = vunpack.i.h.bf16 %v837_v1  ;;  %v838_v34 = vunpack.i.l.bf16 %v837_v1 }
 0x6b0   :  { %v899_v8 = vpop.eup %898 }
 0x6b1   :  { %v657_v32 = vmul.f32 %v899_v8, %v1391_v57  ;;  %v759_v57 = vld [vmem:[%s1504_s2 + $0x50] sm:$0xff] }
 0x6b2   :  { %774 = vmatpush.msra.mxu0 %v759_v57  ;;  %803 = vmatpush.msra.mxu1 %v759_v57 }
 0x6b3   :  { %v850_v63 = vpack.i.bf16 %v657_v32, %v656_v2 }
 0x6b4   :  { %775 = vmatpush.msra.mxu0 %v758_v20  ;;  %804 = vmatpush.msra.mxu1 %v758_v20 }
 0x6b5   :  { %851 = vperm.xlu2 %817, %v850_v63   ;;  %v842_v28 = vpop.permute.xlu2 %841 }
 0x6b6   :  { %776 = vmatpush.msra.mxu0 %v757_v60  ;;  %805 = vmatpush.msra.mxu1 %v757_v60  ;;  %v844_v14 = vunpack.i.h.bf16 %v842_v28  ;;  %v843_v39 = vunpack.i.l.bf16 %v842_v28 }
 0x6b8   :  { %777 = vmatpush.msra.mxu0 %v756_v22  ;;  %806 = vmatpush.msra.mxu1 %v756_v22 }
 0x6ba   :  { %778 = vmatpush.msra.mxu0 %v755_v9  ;;  %807 = vmatpush.msra.mxu1 %v755_v9 }
 0x6bc   :  { %779 = vmatpush.msra.mxu0 %v754_v5  ;;  %808 = vmatpush.msra.mxu1 %v754_v5 }
 0x6be   :  { %780 = vmatpush.msra.mxu0 %v753_v10  ;;  %809 = vmatpush.msra.mxu1 %v753_v10 }
 0x6c0   :  { %781 = vmatpush.msra.mxu0 %v752_v15  ;;  %810 = vmatpush.msra.mxu1 %v752_v15 }
 0x6c2   :  { %782 = vmatpush.msra.mxu0 %v751_v61  ;;  %811 = vmatpush.msra.mxu1 %v751_v61 }
 0x6c4   :  { %783 = vmatpush.msra.mxu0 %v750_v23  ;;  %812 = vmatpush.msra.mxu1 %v750_v23 }
 0x6c6   :  { %784 = vmatpush.msra.mxu0 %v749_v0  ;;  %813 = vmatpush.msra.mxu1 %v749_v0 }
 0x6e0   :  { %v826_v18 = vpop.permute.xlu0 %825 }
 0x6e1   :  { %v828_v56 = vunpack.i.h.bf16 %v826_v18  ;;  %v827_v35 = vunpack.i.l.bf16 %v826_v18 }
 0x6e3   :  { %v683_v51 = vsel %vm671_vm2, %v828_v56, %v670_v45  ;;  %v682_v29 = vsel %vm671_vm2, %v827_v35, %v669_v36 }
 0x6e4   :  { %v696_v54 = vsel %vm684_vm3, %v834_v50, %v683_v51  ;;  %v695_v42 = vsel %vm684_vm3, %v833_v52, %v682_v29 }
 0x6e5   :  { %v708_v27 = vsel %vm697_vm4, %v838_v34, %v695_v42  ;;  %v709_v53 = vsel %vm697_vm4, %v839_v31, %v696_v54 }
 0x6e6   :  { %v721_v11 = vsel %vm710_vm5, %v843_v39, %v708_v27  ;;  %v722_v48 = vsel %vm710_vm5, %v844_v14, %v709_v53 }
 0x6e7   :  { %v734_v3 = vsel %vm723_vm6, %v848_v55, %v721_v11  ;;  %v735_v24 = vsel %vm723_vm6, %v849_v30, %v722_v48 }
 0x70f   :  { %v852_v17 = vpop.permute.xlu2 %851 }
 0x710   :  { %v854_v37 = vunpack.i.h.bf16 %v852_v17  ;;  %v853_v62 = vunpack.i.l.bf16 %v852_v17 }
 0x712   :  { %v747_v16 = vsel %vm736_vm7, %v853_v62, %v734_v3  ;;  %v748_v25 = vsel %vm736_vm7, %v854_v37, %v735_v24 }
 0x713   :  { %785 = vmatmul.f32.vlgmr.msra.gmra.mxu0 %v747_v16  ;;  %788 = vmatmul.f32.vlgmr.msra.gmra.mxu1 %v748_v25 }
 0x790   :  { %v786_v41 = vpop.f32.mrf.mxu0  ;;  %v789_v58 = vpop.f32.mrf.mxu1 }
 0x791   :  { %v787_v40 = vadd.f32 %v855_v6, %v786_v41  ;;  %v790_v59 = vadd.f32 %v855_v6, %v789_v58 }
 0x793   :  { %792 = vst [vmem:[%s1505_s4] sm:$0xff] %v787_v40 }
 0x794   :  { %793 = vst [vmem:[%s1505_s4 + $0x8] sm:$0xff] %v790_v59 }

</bundles_post_ra>
